<compile_context>
chip_gen: v6e
topology: v6e:2x2x1
jax: 0.10.0
libtpu: 0.0.40
codegen_flags: <defaults>
</compile_context>

<pallas_src>
import functools
import math

import jax
import jax.numpy as jnp
from jax.experimental import pallas as pl
from jax.experimental.pallas import tpu as pltpu


CONFIG = dict(
    feature_dim=16,
    embed_dim=32,
    hidden_dim=64,
    num_heads=4,
    num_layers=2,
    seq_length=8,
    dropout=0.1,
)


# ----------------------------- fused kernel ---------------------------------

def _fused_audio_encoder_kernel(
    x_ref,                     # [B*S, F]
    pos_ref,                   # [S, E]
    fp_w_ref, fp_b_ref,        # [F, E], [1, E]
    ln_g_ref, ln_b_ref,        # [1, E], [1, E]
    qkv_w_ref, qkv_b_ref,      # [L, E, 3E], [L, 1, 3E]
    ao_w_ref, ao_b_ref,        # [L, E, E],  [L, 1, E]
    ln1_g_ref, ln1_b_ref,      # [L, 1, E] x 2
    ff1_w_ref, ff1_b_ref,      # [L, E, DF], [L, 1, DF]
    ff2_w_ref, ff2_b_ref,      # [L, DF, E], [L, 1, E]
    ln2_g_ref, ln2_b_ref,      # [L, 1, E] x 2
    out_w_ref, out_b_ref,      # [E, DF], [1, DF]
    o_ref,                     # [B*S, DF]  (output)
    attn_ref,                  # VMEM scratch [B*S, E]
    *, batch, seq, num_heads, num_layers, eps):
    B, S, H, L = batch, seq, num_heads, num_layers
    E = fp_w_ref.shape[1]
    Dh = E // H
    scale = 1.0 / math.sqrt(Dh)

    def layer_norm(x, g, b):
        mean = jnp.mean(x, axis=-1, keepdims=True)
        var = jnp.mean((x - mean) ** 2, axis=-1, keepdims=True)
        return (x - mean) * jax.lax.rsqrt(var + eps) * g + b

    def linear(x, w, b):
        return jnp.dot(x, w, preferred_element_type=jnp.float32) + b

    # feature_projection + pos_embedding + layer_norm  (all in VMEM)
    h = linear(x_ref[...], fp_w_ref[...], fp_b_ref[...])          # [B*S, E]
    pos = pos_ref[...]                                            # [S, E]
    pos_tiled = jnp.concatenate([pos] * B, axis=0) if B > 1 else pos
    h = layer_norm(h + pos_tiled, ln_g_ref[...], ln_b_ref[...])

    # TransformerEncoder layers (post-norm, relu, batch_first, no key padding).
    for li in range(L):
        # --- self attention ---
        qkv = linear(h, qkv_w_ref[li], qkv_b_ref[li])             # [B*S, 3E]
        q = qkv[:, 0 * E:1 * E]
        k = qkv[:, 1 * E:2 * E]
        v = qkv[:, 2 * E:3 * E]
        # All (batch, head) slices handled in this single kernel invocation;
        # static unrolled loop -> no per-head grid-step overhead.
        for b in range(B):
            r0, r1 = b * S, (b + 1) * S
            for hh in range(H):
                c0, c1 = hh * Dh, (hh + 1) * Dh
                q_bh = q[r0:r1, c0:c1]                            # [S, Dh]
                k_bh = k[r0:r1, c0:c1]
                v_bh = v[r0:r1, c0:c1]
                s = jnp.dot(q_bh, k_bh.T,
                            preferred_element_type=jnp.float32) * scale
                m = jnp.max(s, axis=-1, keepdims=True)
                p = jnp.exp(s - m)
                denom = jnp.sum(p, axis=-1, keepdims=True)
                p = p * pl.reciprocal(denom, approx=True)          # EUP, not VPU divide
                attn_ref[r0:r1, c0:c1] = jnp.dot(
                    p, v_bh, preferred_element_type=jnp.float32)
        a = linear(attn_ref[...], ao_w_ref[li], ao_b_ref[li])      # [B*S, E]
        h = layer_norm(h + a, ln1_g_ref[li], ln1_b_ref[li])

        # --- feed forward (relu) ---
        f = jnp.maximum(linear(h, ff1_w_ref[li], ff1_b_ref[li]), 0.0)
        f = linear(f, ff2_w_ref[li], ff2_b_ref[li])
        h = layer_norm(h + f, ln2_g_ref[li], ln2_b_ref[li])

    # output_projection (+ dropout, identity in eval mode) -> single HBM store
    o_ref[...] = linear(h, out_w_ref[...], out_b_ref[...])


# ----------------------------- wrapper ---------------------------------------

def audio_encoder_forward(audio_features, params, cfg):
    """audio_features: [B, S, feature_dim]  ->  [B, S, hidden_dim]"""
    B, S, F = audio_features.shape
    E = cfg["embed_dim"]
    DF = cfg["hidden_dim"]
    L = cfg["num_layers"]

    # TODO(synk): seq_len > seq_length branch (F.interpolate of pos_embedding)
    # not implemented; seq_len <= seq_length path only.
    x2 = audio_features.reshape(B * S, F).astype(jnp.float32)
    pos = params["pos"][:S]

    kernel = functools.partial(
        _fused_audio_encoder_kernel,
        batch=B, seq=S, num_heads=cfg["num_heads"], num_layers=L, eps=1e-5)

    out = pl.pallas_call(
        kernel,
        out_shape=jax.ShapeDtypeStruct((B * S, DF), jnp.float32),
        scratch_shapes=[pltpu.VMEM((B * S, E), jnp.float32)],
    )(
        x2, pos,
        params["fp_w"], params["fp_b"],
        params["ln_g"], params["ln_b"],
        params["qkv_w"], params["qkv_b"],
        params["attn_out_w"], params["attn_out_b"],
        params["ln1_g"], params["ln1_b"],
        params["ff1_w"], params["ff1_b"],
        params["ff2_w"], params["ff2_b"],
        params["ln2_g"], params["ln2_b"],
        params["out_w"], params["out_b"],
    )
    return out.reshape(B, S, DF)


# ----------------------------- params ----------------------------------------

def init_params(key, cfg):
    keys = iter(jax.random.split(key, 64))

    def nrm(shape, scale=0.02):
        return (scale * jax.random.normal(next(keys), shape)).astype(jnp.float32)

    F = cfg["feature_dim"]
    E = cfg["embed_dim"]
    DF = cfg["hidden_dim"]
    L = cfg["num_layers"]
    return {
        "fp_w": nrm((F, E)),
        "fp_b": nrm((1, E)),
        "pos": nrm((cfg["seq_length"], E), scale=1.0),
        "ln_g": jnp.ones((1, E), jnp.float32),
        "ln_b": jnp.zeros((1, E), jnp.float32),
        # per-layer weights stacked along a leading L axis (static-indexed in-kernel)
        "qkv_w": nrm((L, E, 3 * E)),
        "qkv_b": nrm((L, 1, 3 * E)),
        "attn_out_w": nrm((L, E, E)),
        "attn_out_b": nrm((L, 1, E)),
        "ln1_g": jnp.ones((L, 1, E), jnp.float32),
        "ln1_b": jnp.zeros((L, 1, E), jnp.float32),
        "ff1_w": nrm((L, E, DF)),
        "ff1_b": nrm((L, 1, DF)),
        "ff2_w": nrm((L, DF, E)),
        "ff2_b": nrm((L, 1, E)),
        "ln2_g": jnp.ones((L, 1, E), jnp.float32),
        "ln2_b": jnp.zeros((L, 1, E), jnp.float32),
        "out_w": nrm((E, DF)),
        "out_b": nrm((1, DF)),
    }


# ----------------------------- main ------------------------------------------

if __name__ == "__main__":
    key = jax.random.PRNGKey(0)
    k_param, k_input = jax.random.split(key)

    params = init_params(k_param, CONFIG)

    B, S, F = 2, CONFIG["seq_length"], CONFIG["feature_dim"]
    audio_features = jax.random.normal(k_input, (B, S, F), dtype=jnp.float32)

    fwd = jax.jit(functools.partial(audio_encoder_forward, cfg=CONFIG))
    out = fwd(audio_features, params)
    out = jax.block_until_ready(out)

    assert out.shape == (B, S, CONFIG["hidden_dim"]), out.shape
    assert bool(jnp.all(jnp.isfinite(out)))
    print("KERNEL_OK")
</pallas_src>

<mosaic_0001>
module attributes {stable_mosaic.version = 11 : i64} {
  func.func @_fused_audio_encoder_kernel(%arg0: memref<16x16xf32, #tpu.memory_space<vmem>>, %arg1: memref<8x32xf32, #tpu.memory_space<vmem>>, %arg2: memref<16x32xf32, #tpu.memory_space<vmem>>, %arg3: memref<1x32xf32, #tpu.memory_space<vmem>>, %arg4: memref<1x32xf32, #tpu.memory_space<vmem>>, %arg5: memref<1x32xf32, #tpu.memory_space<vmem>>, %arg6: memref<2x32x96xf32, #tpu.memory_space<vmem>>, %arg7: memref<2x1x96xf32, #tpu.memory_space<vmem>>, %arg8: memref<2x32x32xf32, #tpu.memory_space<vmem>>, %arg9: memref<2x1x32xf32, #tpu.memory_space<vmem>>, %arg10: memref<2x1x32xf32, #tpu.memory_space<vmem>>, %arg11: memref<2x1x32xf32, #tpu.memory_space<vmem>>, %arg12: memref<2x32x64xf32, #tpu.memory_space<vmem>>, %arg13: memref<2x1x64xf32, #tpu.memory_space<vmem>>, %arg14: memref<2x64x32xf32, #tpu.memory_space<vmem>>, %arg15: memref<2x1x32xf32, #tpu.memory_space<vmem>>, %arg16: memref<2x1x32xf32, #tpu.memory_space<vmem>>, %arg17: memref<2x1x32xf32, #tpu.memory_space<vmem>>, %arg18: memref<32x64xf32, #tpu.memory_space<vmem>>, %arg19: memref<1x64xf32, #tpu.memory_space<vmem>>, %arg20: memref<16x64xf32, #tpu.memory_space<vmem>>, %arg21: memref<16x32xf32, #tpu.memory_space<vmem>>) attributes {dimension_semantics = [], scalar_prefetch = 0 : i64, scratch_operands = 1 : i64, tpu.core_type = #tpu.core_type<tc>} {
    %c0 = arith.constant 0 : index
    %c0_0 = arith.constant 0 : index
    %0 = vector.load %arg0[%c0, %c0_0] : memref<16x16xf32, #tpu.memory_space<vmem>>, vector<16x16xf32>
    %c0_1 = arith.constant 0 : index
    %c0_2 = arith.constant 0 : index
    %1 = vector.load %arg2[%c0_1, %c0_2] : memref<16x32xf32, #tpu.memory_space<vmem>>, vector<16x32xf32>
    %c0_3 = arith.constant 0 : index
    %c0_4 = arith.constant 0 : index
    %2 = vector.load %arg3[%c0_3, %c0_4] : memref<1x32xf32, #tpu.memory_space<vmem>>, vector<1x32xf32>
    %cst = arith.constant dense<0.000000e+00> : vector<16x32xf32>
    %3 = tpu.matmul %0, %1, %cst {dimension_numbers = #tpu.dot_dimension_numbers<[1], [0], [0], [1], [0, 0, 1, 1], [], []>} : vector<16x16xf32>, vector<16x32xf32>, vector<16x32xf32> -> vector<16x32xf32>
    %4 = vector.broadcast %2 : vector<1x32xf32> to vector<16x32xf32>
    %5 = arith.addf %3, %4 : vector<16x32xf32>
    %c0_5 = arith.constant 0 : index
    %c0_6 = arith.constant 0 : index
    %6 = vector.load %arg1[%c0_5, %c0_6] : memref<8x32xf32, #tpu.memory_space<vmem>>, vector<8x32xf32>
    %7 = tpu.concatenate %6, %6 in 0 : vector<8x32xf32>, vector<8x32xf32> -> vector<16x32xf32>
    %8 = arith.addf %5, %7 : vector<16x32xf32>
    %c0_7 = arith.constant 0 : index
    %c0_8 = arith.constant 0 : index
    %9 = vector.load %arg4[%c0_7, %c0_8] : memref<1x32xf32, #tpu.memory_space<vmem>>, vector<1x32xf32>
    %c0_9 = arith.constant 0 : index
    %c0_10 = arith.constant 0 : index
    %10 = vector.load %arg5[%c0_9, %c0_10] : memref<1x32xf32, #tpu.memory_space<vmem>>, vector<1x32xf32>
    %cst_11 = arith.constant dense<0.000000e+00> : vector<16xf32>
    %11 = vector.multi_reduction <add>, %8, %cst_11 [1] : vector<16x32xf32> to vector<16xf32>
    %12 = vector.shape_cast %11 : vector<16xf32> to vector<16x1xf32>
    %cst_12 = arith.constant 3.200000e+01 : f32
    %13 = vector.broadcast %cst_12 : f32 to vector<16x1xf32>
    %14 = arith.divf %12, %13 : vector<16x1xf32>
    %15 = vector.broadcast %14 : vector<16x1xf32> to vector<16x32xf32>
    %16 = arith.subf %8, %15 : vector<16x32xf32>
    %17 = arith.mulf %16, %16 : vector<16x32xf32>
    %cst_13 = arith.constant dense<0.000000e+00> : vector<16xf32>
    %18 = vector.multi_reduction <add>, %17, %cst_13 [1] : vector<16x32xf32> to vector<16xf32>
    %19 = vector.shape_cast %18 : vector<16xf32> to vector<16x1xf32>
    %cst_14 = arith.constant 3.200000e+01 : f32
    %20 = vector.broadcast %cst_14 : f32 to vector<16x1xf32>
    %21 = arith.divf %19, %20 : vector<16x1xf32>
    %22 = vector.broadcast %14 : vector<16x1xf32> to vector<16x32xf32>
    %23 = arith.subf %8, %22 : vector<16x32xf32>
    %cst_15 = arith.constant 9.99999974E-6 : f32
    %24 = vector.broadcast %cst_15 : f32 to vector<16x1xf32>
    %25 = arith.addf %21, %24 : vector<16x1xf32>
    %26 = math.rsqrt %25 : vector<16x1xf32>
    %27 = vector.broadcast %26 : vector<16x1xf32> to vector<16x32xf32>
    %28 = arith.mulf %23, %27 : vector<16x32xf32>
    %29 = vector.broadcast %9 : vector<1x32xf32> to vector<16x32xf32>
    %30 = arith.mulf %28, %29 : vector<16x32xf32>
    %31 = vector.broadcast %10 : vector<1x32xf32> to vector<16x32xf32>
    %32 = arith.addf %30, %31 : vector<16x32xf32>
    %c0_16 = arith.constant 0 : index
    %c0_17 = arith.constant 0 : index
    %c0_18 = arith.constant 0 : index
    %33 = vector.load %arg6[%c0_16, %c0_17, %c0_18] : memref<2x32x96xf32, #tpu.memory_space<vmem>>, vector<1x32x96xf32>
    %34 = vector.shape_cast %33 : vector<1x32x96xf32> to vector<32x96xf32>
    %c0_19 = arith.constant 0 : index
    %c0_20 = arith.constant 0 : index
    %c0_21 = arith.constant 0 : index
    %35 = vector.load %arg7[%c0_19, %c0_20, %c0_21] : memref<2x1x96xf32, #tpu.memory_space<vmem>>, vector<1x1x96xf32>
    %36 = vector.shape_cast %35 : vector<1x1x96xf32> to vector<1x96xf32>
    %cst_22 = arith.constant dense<0.000000e+00> : vector<16x96xf32>
    %37 = tpu.matmul %32, %34, %cst_22 {dimension_numbers = #tpu.dot_dimension_numbers<[1], [0], [0], [1], [0, 0, 1, 1], [], []>} : vector<16x32xf32>, vector<32x96xf32>, vector<16x96xf32> -> vector<16x96xf32>
    %38 = vector.broadcast %36 : vector<1x96xf32> to vector<16x96xf32>
    %39 = arith.addf %37, %38 : vector<16x96xf32>
    %40 = vector.extract_strided_slice %39 {offsets = [0, 0], sizes = [16, 32], strides = [1, 1]} : vector<16x96xf32> to vector<16x32xf32>
    %41 = vector.extract_strided_slice %39 {offsets = [0, 32], sizes = [16, 32], strides = [1, 1]} : vector<16x96xf32> to vector<16x32xf32>
    %42 = vector.extract_strided_slice %39 {offsets = [0, 64], sizes = [16, 32], strides = [1, 1]} : vector<16x96xf32> to vector<16x32xf32>
    %43 = vector.extract_strided_slice %40 {offsets = [0, 0], sizes = [8, 8], strides = [1, 1]} : vector<16x32xf32> to vector<8x8xf32>
    %44 = vector.extract_strided_slice %41 {offsets = [0, 0], sizes = [8, 8], strides = [1, 1]} : vector<16x32xf32> to vector<8x8xf32>
    %45 = vector.extract_strided_slice %42 {offsets = [0, 0], sizes = [8, 8], strides = [1, 1]} : vector<16x32xf32> to vector<8x8xf32>
    %46 = tpu.transpose %44, [1, 0] : vector<8x8xf32> -> vector<8x8xf32>
    %cst_23 = arith.constant dense<0.000000e+00> : vector<8x8xf32>
    %47 = tpu.matmul %43, %46, %cst_23 {dimension_numbers = #tpu.dot_dimension_numbers<[1], [0], [0], [1], [0, 0, 1, 1], [], []>} : vector<8x8xf32>, vector<8x8xf32>, vector<8x8xf32> -> vector<8x8xf32>
    %cst_24 = arith.constant 0.353553385 : f32
    %48 = vector.broadcast %cst_24 : f32 to vector<8x8xf32>
    %49 = arith.mulf %47, %48 : vector<8x8xf32>
    %cst_25 = arith.constant dense<0xFF800000> : vector<8xf32>
    %50 = vector.multi_reduction <maximumf>, %49, %cst_25 [1] : vector<8x8xf32> to vector<8xf32>
    %51 = vector.shape_cast %50 : vector<8xf32> to vector<8x1xf32>
    %52 = vector.broadcast %51 : vector<8x1xf32> to vector<8x8xf32>
    %53 = arith.subf %49, %52 : vector<8x8xf32>
    %54 = math.exp %53 : vector<8x8xf32>
    %cst_26 = arith.constant dense<0.000000e+00> : vector<8xf32>
    %55 = vector.multi_reduction <add>, %54, %cst_26 [1] : vector<8x8xf32> to vector<8xf32>
    %56 = vector.shape_cast %55 : vector<8xf32> to vector<8x1xf32>
    %57 = tpu.reciprocal %56 {approx = true} : vector<8x1xf32> -> vector<8x1xf32>
    %58 = vector.broadcast %57 : vector<8x1xf32> to vector<8x8xf32>
    %59 = arith.mulf %54, %58 : vector<8x8xf32>
    %cst_27 = arith.constant dense<0.000000e+00> : vector<8x8xf32>
    %60 = tpu.matmul %59, %45, %cst_27 {dimension_numbers = #tpu.dot_dimension_numbers<[1], [0], [0], [1], [0, 0, 1, 1], [], []>} : vector<8x8xf32>, vector<8x8xf32>, vector<8x8xf32> -> vector<8x8xf32>
    %c0_28 = arith.constant 0 : index
    %c0_29 = arith.constant 0 : index
    %61 = vector.load %arg21[%c0_28, %c0_29] : memref<16x32xf32, #tpu.memory_space<vmem>>, vector<8x8xf32>
    tpu.vector_store %arg21[%c0_28, %c0_29], %60 {strides = array<i32>} : memref<16x32xf32, #tpu.memory_space<vmem>>, vector<8x8xf32>,
    %62 = vector.extract_strided_slice %40 {offsets = [0, 8], sizes = [8, 8], strides = [1, 1]} : vector<16x32xf32> to vector<8x8xf32>
    %63 = vector.extract_strided_slice %41 {offsets = [0, 8], sizes = [8, 8], strides = [1, 1]} : vector<16x32xf32> to vector<8x8xf32>
    %64 = vector.extract_strided_slice %42 {offsets = [0, 8], sizes = [8, 8], strides = [1, 1]} : vector<16x32xf32> to vector<8x8xf32>
    %65 = tpu.transpose %63, [1, 0] : vector<8x8xf32> -> vector<8x8xf32>
    %cst_30 = arith.constant dense<0.000000e+00> : vector<8x8xf32>
    %66 = tpu.matmul %62, %65, %cst_30 {dimension_numbers = #tpu.dot_dimension_numbers<[1], [0], [0], [1], [0, 0, 1, 1], [], []>} : vector<8x8xf32>, vector<8x8xf32>, vector<8x8xf32> -> vector<8x8xf32>
    %cst_31 = arith.constant 0.353553385 : f32
    %67 = vector.broadcast %cst_31 : f32 to vector<8x8xf32>
    %68 = arith.mulf %66, %67 : vector<8x8xf32>
    %cst_32 = arith.constant dense<0xFF800000> : vector<8xf32>
    %69 = vector.multi_reduction <maximumf>, %68, %cst_32 [1] : vector<8x8xf32> to vector<8xf32>
    %70 = vector.shape_cast %69 : vector<8xf32> to vector<8x1xf32>
    %71 = vector.broadcast %70 : vector<8x1xf32> to vector<8x8xf32>
    %72 = arith.subf %68, %71 : vector<8x8xf32>
    %73 = math.exp %72 : vector<8x8xf32>
    %cst_33 = arith.constant dense<0.000000e+00> : vector<8xf32>
    %74 = vector.multi_reduction <add>, %73, %cst_33 [1] : vector<8x8xf32> to vector<8xf32>
    %75 = vector.shape_cast %74 : vector<8xf32> to vector<8x1xf32>
    %76 = tpu.reciprocal %75 {approx = true} : vector<8x1xf32> -> vector<8x1xf32>
    %77 = vector.broadcast %76 : vector<8x1xf32> to vector<8x8xf32>
    %78 = arith.mulf %73, %77 : vector<8x8xf32>
    %cst_34 = arith.constant dense<0.000000e+00> : vector<8x8xf32>
    %79 = tpu.matmul %78, %64, %cst_34 {dimension_numbers = #tpu.dot_dimension_numbers<[1], [0], [0], [1], [0, 0, 1, 1], [], []>} : vector<8x8xf32>, vector<8x8xf32>, vector<8x8xf32> -> vector<8x8xf32>
    %c0_35 = arith.constant 0 : index
    %c8 = arith.constant 8 : index
    %80 = vector.load %arg21[%c0_35, %c8] : memref<16x32xf32, #tpu.memory_space<vmem>>, vector<8x8xf32>
    tpu.vector_store %arg21[%c0_35, %c8], %79 {strides = array<i32>} : memref<16x32xf32, #tpu.memory_space<vmem>>, vector<8x8xf32>,
    %81 = vector.extract_strided_slice %40 {offsets = [0, 16], sizes = [8, 8], strides = [1, 1]} : vector<16x32xf32> to vector<8x8xf32>
    %82 = vector.extract_strided_slice %41 {offsets = [0, 16], sizes = [8, 8], strides = [1, 1]} : vector<16x32xf32> to vector<8x8xf32>
    %83 = vector.extract_strided_slice %42 {offsets = [0, 16], sizes = [8, 8], strides = [1, 1]} : vector<16x32xf32> to vector<8x8xf32>
    %84 = tpu.transpose %82, [1, 0] : vector<8x8xf32> -> vector<8x8xf32>
    %cst_36 = arith.constant dense<0.000000e+00> : vector<8x8xf32>
    %85 = tpu.matmul %81, %84, %cst_36 {dimension_numbers = #tpu.dot_dimension_numbers<[1], [0], [0], [1], [0, 0, 1, 1], [], []>} : vector<8x8xf32>, vector<8x8xf32>, vector<8x8xf32> -> vector<8x8xf32>
    %cst_37 = arith.constant 0.353553385 : f32
    %86 = vector.broadcast %cst_37 : f32 to vector<8x8xf32>
    %87 = arith.mulf %85, %86 : vector<8x8xf32>
    %cst_38 = arith.constant dense<0xFF800000> : vector<8xf32>
    %88 = vector.multi_reduction <maximumf>, %87, %cst_38 [1] : vector<8x8xf32> to vector<8xf32>
    %89 = vector.shape_cast %88 : vector<8xf32> to vector<8x1xf32>
    %90 = vector.broadcast %89 : vector<8x1xf32> to vector<8x8xf32>
    %91 = arith.subf %87, %90 : vector<8x8xf32>
    %92 = math.exp %91 : vector<8x8xf32>
    %cst_39 = arith.constant dense<0.000000e+00> : vector<8xf32>
    %93 = vector.multi_reduction <add>, %92, %cst_39 [1] : vector<8x8xf32> to vector<8xf32>
    %94 = vector.shape_cast %93 : vector<8xf32> to vector<8x1xf32>
    %95 = tpu.reciprocal %94 {approx = true} : vector<8x1xf32> -> vector<8x1xf32>
    %96 = vector.broadcast %95 : vector<8x1xf32> to vector<8x8xf32>
    %97 = arith.mulf %92, %96 : vector<8x8xf32>
    %cst_40 = arith.constant dense<0.000000e+00> : vector<8x8xf32>
    %98 = tpu.matmul %97, %83, %cst_40 {dimension_numbers = #tpu.dot_dimension_numbers<[1], [0], [0], [1], [0, 0, 1, 1], [], []>} : vector<8x8xf32>, vector<8x8xf32>, vector<8x8xf32> -> vector<8x8xf32>
    %c0_41 = arith.constant 0 : index
    %c16 = arith.constant 16 : index
    %99 = vector.load %arg21[%c0_41, %c16] : memref<16x32xf32, #tpu.memory_space<vmem>>, vector<8x8xf32>
    tpu.vector_store %arg21[%c0_41, %c16], %98 {strides = array<i32>} : memref<16x32xf32, #tpu.memory_space<vmem>>, vector<8x8xf32>,
    %100 = vector.extract_strided_slice %40 {offsets = [0, 24], sizes = [8, 8], strides = [1, 1]} : vector<16x32xf32> to vector<8x8xf32>
    %101 = vector.extract_strided_slice %41 {offsets = [0, 24], sizes = [8, 8], strides = [1, 1]} : vector<16x32xf32> to vector<8x8xf32>
    %102 = vector.extract_strided_slice %42 {offsets = [0, 24], sizes = [8, 8], strides = [1, 1]} : vector<16x32xf32> to vector<8x8xf32>
    %103 = tpu.transpose %101, [1, 0] : vector<8x8xf32> -> vector<8x8xf32>
    %cst_42 = arith.constant dense<0.000000e+00> : vector<8x8xf32>
    %104 = tpu.matmul %100, %103, %cst_42 {dimension_numbers = #tpu.dot_dimension_numbers<[1], [0], [0], [1], [0, 0, 1, 1], [], []>} : vector<8x8xf32>, vector<8x8xf32>, vector<8x8xf32> -> vector<8x8xf32>
    %cst_43 = arith.constant 0.353553385 : f32
    %105 = vector.broadcast %cst_43 : f32 to vector<8x8xf32>
    %106 = arith.mulf %104, %105 : vector<8x8xf32>
    %cst_44 = arith.constant dense<0xFF800000> : vector<8xf32>
    %107 = vector.multi_reduction <maximumf>, %106, %cst_44 [1] : vector<8x8xf32> to vector<8xf32>
    %108 = vector.shape_cast %107 : vector<8xf32> to vector<8x1xf32>
    %109 = vector.broadcast %108 : vector<8x1xf32> to vector<8x8xf32>
    %110 = arith.subf %106, %109 : vector<8x8xf32>
    %111 = math.exp %110 : vector<8x8xf32>
    %cst_45 = arith.constant dense<0.000000e+00> : vector<8xf32>
    %112 = vector.multi_reduction <add>, %111, %cst_45 [1] : vector<8x8xf32> to vector<8xf32>
    %113 = vector.shape_cast %112 : vector<8xf32> to vector<8x1xf32>
    %114 = tpu.reciprocal %113 {approx = true} : vector<8x1xf32> -> vector<8x1xf32>
    %115 = vector.broadcast %114 : vector<8x1xf32> to vector<8x8xf32>
    %116 = arith.mulf %111, %115 : vector<8x8xf32>
    %cst_46 = arith.constant dense<0.000000e+00> : vector<8x8xf32>
    %117 = tpu.matmul %116, %102, %cst_46 {dimension_numbers = #tpu.dot_dimension_numbers<[1], [0], [0], [1], [0, 0, 1, 1], [], []>} : vector<8x8xf32>, vector<8x8xf32>, vector<8x8xf32> -> vector<8x8xf32>
    %c0_47 = arith.constant 0 : index
    %c24 = arith.constant 24 : index
    %118 = vector.load %arg21[%c0_47, %c24] : memref<16x32xf32, #tpu.memory_space<vmem>>, vector<8x8xf32>
    tpu.vector_store %arg21[%c0_47, %c24], %117 {strides = array<i32>} : memref<16x32xf32, #tpu.memory_space<vmem>>, vector<8x8xf32>,
    %119 = vector.extract_strided_slice %40 {offsets = [8, 0], sizes = [8, 8], strides = [1, 1]} : vector<16x32xf32> to vector<8x8xf32>
    %120 = vector.extract_strided_slice %41 {offsets = [8, 0], sizes = [8, 8], strides = [1, 1]} : vector<16x32xf32> to vector<8x8xf32>
    %121 = vector.extract_strided_slice %42 {offsets = [8, 0], sizes = [8, 8], strides = [1, 1]} : vector<16x32xf32> to vector<8x8xf32>
    %122 = tpu.transpose %120, [1, 0] : vector<8x8xf32> -> vector<8x8xf32>
    %cst_48 = arith.constant dense<0.000000e+00> : vector<8x8xf32>
    %123 = tpu.matmul %119, %122, %cst_48 {dimension_numbers = #tpu.dot_dimension_numbers<[1], [0], [0], [1], [0, 0, 1, 1], [], []>} : vector<8x8xf32>, vector<8x8xf32>, vector<8x8xf32> -> vector<8x8xf32>
    %cst_49 = arith.constant 0.353553385 : f32
    %124 = vector.broadcast %cst_49 : f32 to vector<8x8xf32>
    %125 = arith.mulf %123, %124 : vector<8x8xf32>
    %cst_50 = arith.constant dense<0xFF800000> : vector<8xf32>
    %126 = vector.multi_reduction <maximumf>, %125, %cst_50 [1] : vector<8x8xf32> to vector<8xf32>
    %127 = vector.shape_cast %126 : vector<8xf32> to vector<8x1xf32>
    %128 = vector.broadcast %127 : vector<8x1xf32> to vector<8x8xf32>
    %129 = arith.subf %125, %128 : vector<8x8xf32>
    %130 = math.exp %129 : vector<8x8xf32>
    %cst_51 = arith.constant dense<0.000000e+00> : vector<8xf32>
    %131 = vector.multi_reduction <add>, %130, %cst_51 [1] : vector<8x8xf32> to vector<8xf32>
    %132 = vector.shape_cast %131 : vector<8xf32> to vector<8x1xf32>
    %133 = tpu.reciprocal %132 {approx = true} : vector<8x1xf32> -> vector<8x1xf32>
    %134 = vector.broadcast %133 : vector<8x1xf32> to vector<8x8xf32>
    %135 = arith.mulf %130, %134 : vector<8x8xf32>
    %cst_52 = arith.constant dense<0.000000e+00> : vector<8x8xf32>
    %136 = tpu.matmul %135, %121, %cst_52 {dimension_numbers = #tpu.dot_dimension_numbers<[1], [0], [0], [1], [0, 0, 1, 1], [], []>} : vector<8x8xf32>, vector<8x8xf32>, vector<8x8xf32> -> vector<8x8xf32>
    %c8_53 = arith.constant 8 : index
    %c0_54 = arith.constant 0 : index
    %137 = vector.load %arg21[%c8_53, %c0_54] : memref<16x32xf32, #tpu.memory_space<vmem>>, vector<8x8xf32>
    tpu.vector_store %arg21[%c8_53, %c0_54], %136 {strides = array<i32>} : memref<16x32xf32, #tpu.memory_space<vmem>>, vector<8x8xf32>,
    %138 = vector.extract_strided_slice %40 {offsets = [8, 8], sizes = [8, 8], strides = [1, 1]} : vector<16x32xf32> to vector<8x8xf32>
    %139 = vector.extract_strided_slice %41 {offsets = [8, 8], sizes = [8, 8], strides = [1, 1]} : vector<16x32xf32> to vector<8x8xf32>
    %140 = vector.extract_strided_slice %42 {offsets = [8, 8], sizes = [8, 8], strides = [1, 1]} : vector<16x32xf32> to vector<8x8xf32>
    %141 = tpu.transpose %139, [1, 0] : vector<8x8xf32> -> vector<8x8xf32>
    %cst_55 = arith.constant dense<0.000000e+00> : vector<8x8xf32>
    %142 = tpu.matmul %138, %141, %cst_55 {dimension_numbers = #tpu.dot_dimension_numbers<[1], [0], [0], [1], [0, 0, 1, 1], [], []>} : vector<8x8xf32>, vector<8x8xf32>, vector<8x8xf32> -> vector<8x8xf32>
    %cst_56 = arith.constant 0.353553385 : f32
    %143 = vector.broadcast %cst_56 : f32 to vector<8x8xf32>
    %144 = arith.mulf %142, %143 : vector<8x8xf32>
    %cst_57 = arith.constant dense<0xFF800000> : vector<8xf32>
    %145 = vector.multi_reduction <maximumf>, %144, %cst_57 [1] : vector<8x8xf32> to vector<8xf32>
    %146 = vector.shape_cast %145 : vector<8xf32> to vector<8x1xf32>
    %147 = vector.broadcast %146 : vector<8x1xf32> to vector<8x8xf32>
    %148 = arith.subf %144, %147 : vector<8x8xf32>
    %149 = math.exp %148 : vector<8x8xf32>
    %cst_58 = arith.constant dense<0.000000e+00> : vector<8xf32>
    %150 = vector.multi_reduction <add>, %149, %cst_58 [1] : vector<8x8xf32> to vector<8xf32>
    %151 = vector.shape_cast %150 : vector<8xf32> to vector<8x1xf32>
    %152 = tpu.reciprocal %151 {approx = true} : vector<8x1xf32> -> vector<8x1xf32>
    %153 = vector.broadcast %152 : vector<8x1xf32> to vector<8x8xf32>
    %154 = arith.mulf %149, %153 : vector<8x8xf32>
    %cst_59 = arith.constant dense<0.000000e+00> : vector<8x8xf32>
    %155 = tpu.matmul %154, %140, %cst_59 {dimension_numbers = #tpu.dot_dimension_numbers<[1], [0], [0], [1], [0, 0, 1, 1], [], []>} : vector<8x8xf32>, vector<8x8xf32>, vector<8x8xf32> -> vector<8x8xf32>
    %c8_60 = arith.constant 8 : index
    %c8_61 = arith.constant 8 : index
    %156 = vector.load %arg21[%c8_60, %c8_61] : memref<16x32xf32, #tpu.memory_space<vmem>>, vector<8x8xf32>
    tpu.vector_store %arg21[%c8_60, %c8_61], %155 {strides = array<i32>} : memref<16x32xf32, #tpu.memory_space<vmem>>, vector<8x8xf32>,
    %157 = vector.extract_strided_slice %40 {offsets = [8, 16], sizes = [8, 8], strides = [1, 1]} : vector<16x32xf32> to vector<8x8xf32>
    %158 = vector.extract_strided_slice %41 {offsets = [8, 16], sizes = [8, 8], strides = [1, 1]} : vector<16x32xf32> to vector<8x8xf32>
    %159 = vector.extract_strided_slice %42 {offsets = [8, 16], sizes = [8, 8], strides = [1, 1]} : vector<16x32xf32> to vector<8x8xf32>
    %160 = tpu.transpose %158, [1, 0] : vector<8x8xf32> -> vector<8x8xf32>
    %cst_62 = arith.constant dense<0.000000e+00> : vector<8x8xf32>
    %161 = tpu.matmul %157, %160, %cst_62 {dimension_numbers = #tpu.dot_dimension_numbers<[1], [0], [0], [1], [0, 0, 1, 1], [], []>} : vector<8x8xf32>, vector<8x8xf32>, vector<8x8xf32> -> vector<8x8xf32>
    %cst_63 = arith.constant 0.353553385 : f32
    %162 = vector.broadcast %cst_63 : f32 to vector<8x8xf32>
    %163 = arith.mulf %161, %162 : vector<8x8xf32>
    %cst_64 = arith.constant dense<0xFF800000> : vector<8xf32>
    %164 = vector.multi_reduction <maximumf>, %163, %cst_64 [1] : vector<8x8xf32> to vector<8xf32>
    %165 = vector.shape_cast %164 : vector<8xf32> to vector<8x1xf32>
    %166 = vector.broadcast %165 : vector<8x1xf32> to vector<8x8xf32>
    %167 = arith.subf %163, %166 : vector<8x8xf32>
    %168 = math.exp %167 : vector<8x8xf32>
    %cst_65 = arith.constant dense<0.000000e+00> : vector<8xf32>
    %169 = vector.multi_reduction <add>, %168, %cst_65 [1] : vector<8x8xf32> to vector<8xf32>
    %170 = vector.shape_cast %169 : vector<8xf32> to vector<8x1xf32>
    %171 = tpu.reciprocal %170 {approx = true} : vector<8x1xf32> -> vector<8x1xf32>
    %172 = vector.broadcast %171 : vector<8x1xf32> to vector<8x8xf32>
    %173 = arith.mulf %168, %172 : vector<8x8xf32>
    %cst_66 = arith.constant dense<0.000000e+00> : vector<8x8xf32>
    %174 = tpu.matmul %173, %159, %cst_66 {dimension_numbers = #tpu.dot_dimension_numbers<[1], [0], [0], [1], [0, 0, 1, 1], [], []>} : vector<8x8xf32>, vector<8x8xf32>, vector<8x8xf32> -> vector<8x8xf32>
    %c8_67 = arith.constant 8 : index
    %c16_68 = arith.constant 16 : index
    %175 = vector.load %arg21[%c8_67, %c16_68] : memref<16x32xf32, #tpu.memory_space<vmem>>, vector<8x8xf32>
    tpu.vector_store %arg21[%c8_67, %c16_68], %174 {strides = array<i32>} : memref<16x32xf32, #tpu.memory_space<vmem>>, vector<8x8xf32>,
    %176 = vector.extract_strided_slice %40 {offsets = [8, 24], sizes = [8, 8], strides = [1, 1]} : vector<16x32xf32> to vector<8x8xf32>
    %177 = vector.extract_strided_slice %41 {offsets = [8, 24], sizes = [8, 8], strides = [1, 1]} : vector<16x32xf32> to vector<8x8xf32>
    %178 = vector.extract_strided_slice %42 {offsets = [8, 24], sizes = [8, 8], strides = [1, 1]} : vector<16x32xf32> to vector<8x8xf32>
    %179 = tpu.transpose %177, [1, 0] : vector<8x8xf32> -> vector<8x8xf32>
    %cst_69 = arith.constant dense<0.000000e+00> : vector<8x8xf32>
    %180 = tpu.matmul %176, %179, %cst_69 {dimension_numbers = #tpu.dot_dimension_numbers<[1], [0], [0], [1], [0, 0, 1, 1], [], []>} : vector<8x8xf32>, vector<8x8xf32>, vector<8x8xf32> -> vector<8x8xf32>
    %cst_70 = arith.constant 0.353553385 : f32
    %181 = vector.broadcast %cst_70 : f32 to vector<8x8xf32>
    %182 = arith.mulf %180, %181 : vector<8x8xf32>
    %cst_71 = arith.constant dense<0xFF800000> : vector<8xf32>
    %183 = vector.multi_reduction <maximumf>, %182, %cst_71 [1] : vector<8x8xf32> to vector<8xf32>
    %184 = vector.shape_cast %183 : vector<8xf32> to vector<8x1xf32>
    %185 = vector.broadcast %184 : vector<8x1xf32> to vector<8x8xf32>
    %186 = arith.subf %182, %185 : vector<8x8xf32>
    %187 = math.exp %186 : vector<8x8xf32>
    %cst_72 = arith.constant dense<0.000000e+00> : vector<8xf32>
    %188 = vector.multi_reduction <add>, %187, %cst_72 [1] : vector<8x8xf32> to vector<8xf32>
    %189 = vector.shape_cast %188 : vector<8xf32> to vector<8x1xf32>
    %190 = tpu.reciprocal %189 {approx = true} : vector<8x1xf32> -> vector<8x1xf32>
    %191 = vector.broadcast %190 : vector<8x1xf32> to vector<8x8xf32>
    %192 = arith.mulf %187, %191 : vector<8x8xf32>
    %cst_73 = arith.constant dense<0.000000e+00> : vector<8x8xf32>
    %193 = tpu.matmul %192, %178, %cst_73 {dimension_numbers = #tpu.dot_dimension_numbers<[1], [0], [0], [1], [0, 0, 1, 1], [], []>} : vector<8x8xf32>, vector<8x8xf32>, vector<8x8xf32> -> vector<8x8xf32>
    %c8_74 = arith.constant 8 : index
    %c24_75 = arith.constant 24 : index
    %194 = vector.load %arg21[%c8_74, %c24_75] : memref<16x32xf32, #tpu.memory_space<vmem>>, vector<8x8xf32>
    tpu.vector_store %arg21[%c8_74, %c24_75], %193 {strides = array<i32>} : memref<16x32xf32, #tpu.memory_space<vmem>>, vector<8x8xf32>,
    %c0_76 = arith.constant 0 : index
    %c0_77 = arith.constant 0 : index
    %195 = vector.load %arg21[%c0_76, %c0_77] : memref<16x32xf32, #tpu.memory_space<vmem>>, vector<16x32xf32>
    %c0_78 = arith.constant 0 : index
    %c0_79 = arith.constant 0 : index
    %c0_80 = arith.constant 0 : index
    %196 = vector.load %arg8[%c0_78, %c0_79, %c0_80] : memref<2x32x32xf32, #tpu.memory_space<vmem>>, vector<1x32x32xf32>
    %197 = vector.shape_cast %196 : vector<1x32x32xf32> to vector<32x32xf32>
    %c0_81 = arith.constant 0 : index
    %c0_82 = arith.constant 0 : index
    %c0_83 = arith.constant 0 : index
    %198 = vector.load %arg9[%c0_81, %c0_82, %c0_83] : memref<2x1x32xf32, #tpu.memory_space<vmem>>, vector<1x1x32xf32>
    %199 = vector.shape_cast %198 : vector<1x1x32xf32> to vector<1x32xf32>
    %cst_84 = arith.constant dense<0.000000e+00> : vector<16x32xf32>
    %200 = tpu.matmul %195, %197, %cst_84 {dimension_numbers = #tpu.dot_dimension_numbers<[1], [0], [0], [1], [0, 0, 1, 1], [], []>} : vector<16x32xf32>, vector<32x32xf32>, vector<16x32xf32> -> vector<16x32xf32>
    %201 = vector.broadcast %199 : vector<1x32xf32> to vector<16x32xf32>
    %202 = arith.addf %200, %201 : vector<16x32xf32>
    %203 = arith.addf %32, %202 : vector<16x32xf32>
    %c0_85 = arith.constant 0 : index
    %c0_86 = arith.constant 0 : index
    %c0_87 = arith.constant 0 : index
    %204 = vector.load %arg10[%c0_85, %c0_86, %c0_87] : memref<2x1x32xf32, #tpu.memory_space<vmem>>, vector<1x1x32xf32>
    %205 = vector.shape_cast %204 : vector<1x1x32xf32> to vector<1x32xf32>
    %c0_88 = arith.constant 0 : index
    %c0_89 = arith.constant 0 : index
    %c0_90 = arith.constant 0 : index
    %206 = vector.load %arg11[%c0_88, %c0_89, %c0_90] : memref<2x1x32xf32, #tpu.memory_space<vmem>>, vector<1x1x32xf32>
    %207 = vector.shape_cast %206 : vector<1x1x32xf32> to vector<1x32xf32>
    %cst_91 = arith.constant dense<0.000000e+00> : vector<16xf32>
    %208 = vector.multi_reduction <add>, %203, %cst_91 [1] : vector<16x32xf32> to vector<16xf32>
    %209 = vector.shape_cast %208 : vector<16xf32> to vector<16x1xf32>
    %cst_92 = arith.constant 3.200000e+01 : f32
    %210 = vector.broadcast %cst_92 : f32 to vector<16x1xf32>
    %211 = arith.divf %209, %210 : vector<16x1xf32>
    %212 = vector.broadcast %211 : vector<16x1xf32> to vector<16x32xf32>
    %213 = arith.subf %203, %212 : vector<16x32xf32>
    %214 = arith.mulf %213, %213 : vector<16x32xf32>
    %cst_93 = arith.constant dense<0.000000e+00> : vector<16xf32>
    %215 = vector.multi_reduction <add>, %214, %cst_93 [1] : vector<16x32xf32> to vector<16xf32>
    %216 = vector.shape_cast %215 : vector<16xf32> to vector<16x1xf32>
    %cst_94 = arith.constant 3.200000e+01 : f32
    %217 = vector.broadcast %cst_94 : f32 to vector<16x1xf32>
    %218 = arith.divf %216, %217 : vector<16x1xf32>
    %219 = vector.broadcast %211 : vector<16x1xf32> to vector<16x32xf32>
    %220 = arith.subf %203, %219 : vector<16x32xf32>
    %cst_95 = arith.constant 9.99999974E-6 : f32
    %221 = vector.broadcast %cst_95 : f32 to vector<16x1xf32>
    %222 = arith.addf %218, %221 : vector<16x1xf32>
    %223 = math.rsqrt %222 : vector<16x1xf32>
    %224 = vector.broadcast %223 : vector<16x1xf32> to vector<16x32xf32>
    %225 = arith.mulf %220, %224 : vector<16x32xf32>
    %226 = vector.broadcast %205 : vector<1x32xf32> to vector<16x32xf32>
    %227 = arith.mulf %225, %226 : vector<16x32xf32>
    %228 = vector.broadcast %207 : vector<1x32xf32> to vector<16x32xf32>
    %229 = arith.addf %227, %228 : vector<16x32xf32>
    %c0_96 = arith.constant 0 : index
    %c0_97 = arith.constant 0 : index
    %c0_98 = arith.constant 0 : index
    %230 = vector.load %arg12[%c0_96, %c0_97, %c0_98] : memref<2x32x64xf32, #tpu.memory_space<vmem>>, vector<1x32x64xf32>
    %231 = vector.shape_cast %230 : vector<1x32x64xf32> to vector<32x64xf32>
    %c0_99 = arith.constant 0 : index
    %c0_100 = arith.constant 0 : index
    %c0_101 = arith.constant 0 : index
    %232 = vector.load %arg13[%c0_99, %c0_100, %c0_101] : memref<2x1x64xf32, #tpu.memory_space<vmem>>, vector<1x1x64xf32>
    %233 = vector.shape_cast %232 : vector<1x1x64xf32> to vector<1x64xf32>
    %cst_102 = arith.constant dense<0.000000e+00> : vector<16x64xf32>
    %234 = tpu.matmul %229, %231, %cst_102 {dimension_numbers = #tpu.dot_dimension_numbers<[1], [0], [0], [1], [0, 0, 1, 1], [], []>} : vector<16x32xf32>, vector<32x64xf32>, vector<16x64xf32> -> vector<16x64xf32>
    %235 = vector.broadcast %233 : vector<1x64xf32> to vector<16x64xf32>
    %236 = arith.addf %234, %235 : vector<16x64xf32>
    %cst_103 = arith.constant 0.000000e+00 : f32
    %237 = vector.broadcast %cst_103 : f32 to vector<16x64xf32>
    %238 = arith.maximumf %236, %237 : vector<16x64xf32>
    %c0_104 = arith.constant 0 : index
    %c0_105 = arith.constant 0 : index
    %c0_106 = arith.constant 0 : index
    %239 = vector.load %arg14[%c0_104, %c0_105, %c0_106] : memref<2x64x32xf32, #tpu.memory_space<vmem>>, vector<1x64x32xf32>
    %240 = vector.shape_cast %239 : vector<1x64x32xf32> to vector<64x32xf32>
    %c0_107 = arith.constant 0 : index
    %c0_108 = arith.constant 0 : index
    %c0_109 = arith.constant 0 : index
    %241 = vector.load %arg15[%c0_107, %c0_108, %c0_109] : memref<2x1x32xf32, #tpu.memory_space<vmem>>, vector<1x1x32xf32>
    %242 = vector.shape_cast %241 : vector<1x1x32xf32> to vector<1x32xf32>
    %cst_110 = arith.constant dense<0.000000e+00> : vector<16x32xf32>
    %243 = tpu.matmul %238, %240, %cst_110 {dimension_numbers = #tpu.dot_dimension_numbers<[1], [0], [0], [1], [0, 0, 1, 1], [], []>} : vector<16x64xf32>, vector<64x32xf32>, vector<16x32xf32> -> vector<16x32xf32>
    %244 = vector.broadcast %242 : vector<1x32xf32> to vector<16x32xf32>
    %245 = arith.addf %243, %244 : vector<16x32xf32>
    %246 = arith.addf %229, %245 : vector<16x32xf32>
    %c0_111 = arith.constant 0 : index
    %c0_112 = arith.constant 0 : index
    %c0_113 = arith.constant 0 : index
    %247 = vector.load %arg16[%c0_111, %c0_112, %c0_113] : memref<2x1x32xf32, #tpu.memory_space<vmem>>, vector<1x1x32xf32>
    %248 = vector.shape_cast %247 : vector<1x1x32xf32> to vector<1x32xf32>
    %c0_114 = arith.constant 0 : index
    %c0_115 = arith.constant 0 : index
    %c0_116 = arith.constant 0 : index
    %249 = vector.load %arg17[%c0_114, %c0_115, %c0_116] : memref<2x1x32xf32, #tpu.memory_space<vmem>>, vector<1x1x32xf32>
    %250 = vector.shape_cast %249 : vector<1x1x32xf32> to vector<1x32xf32>
    %cst_117 = arith.constant dense<0.000000e+00> : vector<16xf32>
    %251 = vector.multi_reduction <add>, %246, %cst_117 [1] : vector<16x32xf32> to vector<16xf32>
    %252 = vector.shape_cast %251 : vector<16xf32> to vector<16x1xf32>
    %cst_118 = arith.constant 3.200000e+01 : f32
    %253 = vector.broadcast %cst_118 : f32 to vector<16x1xf32>
    %254 = arith.divf %252, %253 : vector<16x1xf32>
    %255 = vector.broadcast %254 : vector<16x1xf32> to vector<16x32xf32>
    %256 = arith.subf %246, %255 : vector<16x32xf32>
    %257 = arith.mulf %256, %256 : vector<16x32xf32>
    %cst_119 = arith.constant dense<0.000000e+00> : vector<16xf32>
    %258 = vector.multi_reduction <add>, %257, %cst_119 [1] : vector<16x32xf32> to vector<16xf32>
    %259 = vector.shape_cast %258 : vector<16xf32> to vector<16x1xf32>
    %cst_120 = arith.constant 3.200000e+01 : f32
    %260 = vector.broadcast %cst_120 : f32 to vector<16x1xf32>
    %261 = arith.divf %259, %260 : vector<16x1xf32>
    %262 = vector.broadcast %254 : vector<16x1xf32> to vector<16x32xf32>
    %263 = arith.subf %246, %262 : vector<16x32xf32>
    %cst_121 = arith.constant 9.99999974E-6 : f32
    %264 = vector.broadcast %cst_121 : f32 to vector<16x1xf32>
    %265 = arith.addf %261, %264 : vector<16x1xf32>
    %266 = math.rsqrt %265 : vector<16x1xf32>
    %267 = vector.broadcast %266 : vector<16x1xf32> to vector<16x32xf32>
    %268 = arith.mulf %263, %267 : vector<16x32xf32>
    %269 = vector.broadcast %248 : vector<1x32xf32> to vector<16x32xf32>
    %270 = arith.mulf %268, %269 : vector<16x32xf32>
    %271 = vector.broadcast %250 : vector<1x32xf32> to vector<16x32xf32>
    %272 = arith.addf %270, %271 : vector<16x32xf32>
    %c1 = arith.constant 1 : index
    %c0_122 = arith.constant 0 : index
    %c0_123 = arith.constant 0 : index
    %273 = vector.load %arg6[%c1, %c0_122, %c0_123] : memref<2x32x96xf32, #tpu.memory_space<vmem>>, vector<1x32x96xf32>
    %274 = vector.shape_cast %273 : vector<1x32x96xf32> to vector<32x96xf32>
    %c1_124 = arith.constant 1 : index
    %c0_125 = arith.constant 0 : index
    %c0_126 = arith.constant 0 : index
    %275 = vector.load %arg7[%c1_124, %c0_125, %c0_126] : memref<2x1x96xf32, #tpu.memory_space<vmem>>, vector<1x1x96xf32>
    %276 = vector.shape_cast %275 : vector<1x1x96xf32> to vector<1x96xf32>
    %cst_127 = arith.constant dense<0.000000e+00> : vector<16x96xf32>
    %277 = tpu.matmul %272, %274, %cst_127 {dimension_numbers = #tpu.dot_dimension_numbers<[1], [0], [0], [1], [0, 0, 1, 1], [], []>} : vector<16x32xf32>, vector<32x96xf32>, vector<16x96xf32> -> vector<16x96xf32>
    %278 = vector.broadcast %276 : vector<1x96xf32> to vector<16x96xf32>
    %279 = arith.addf %277, %278 : vector<16x96xf32>
    %280 = vector.extract_strided_slice %279 {offsets = [0, 0], sizes = [16, 32], strides = [1, 1]} : vector<16x96xf32> to vector<16x32xf32>
    %281 = vector.extract_strided_slice %279 {offsets = [0, 32], sizes = [16, 32], strides = [1, 1]} : vector<16x96xf32> to vector<16x32xf32>
    %282 = vector.extract_strided_slice %279 {offsets = [0, 64], sizes = [16, 32], strides = [1, 1]} : vector<16x96xf32> to vector<16x32xf32>
    %283 = vector.extract_strided_slice %280 {offsets = [0, 0], sizes = [8, 8], strides = [1, 1]} : vector<16x32xf32> to vector<8x8xf32>
    %284 = vector.extract_strided_slice %281 {offsets = [0, 0], sizes = [8, 8], strides = [1, 1]} : vector<16x32xf32> to vector<8x8xf32>
    %285 = vector.extract_strided_slice %282 {offsets = [0, 0], sizes = [8, 8], strides = [1, 1]} : vector<16x32xf32> to vector<8x8xf32>
    %286 = tpu.transpose %284, [1, 0] : vector<8x8xf32> -> vector<8x8xf32>
    %cst_128 = arith.constant dense<0.000000e+00> : vector<8x8xf32>
    %287 = tpu.matmul %283, %286, %cst_128 {dimension_numbers = #tpu.dot_dimension_numbers<[1], [0], [0], [1], [0, 0, 1, 1], [], []>} : vector<8x8xf32>, vector<8x8xf32>, vector<8x8xf32> -> vector<8x8xf32>
    %cst_129 = arith.constant 0.353553385 : f32
    %288 = vector.broadcast %cst_129 : f32 to vector<8x8xf32>
    %289 = arith.mulf %287, %288 : vector<8x8xf32>
    %cst_130 = arith.constant dense<0xFF800000> : vector<8xf32>
    %290 = vector.multi_reduction <maximumf>, %289, %cst_130 [1] : vector<8x8xf32> to vector<8xf32>
    %291 = vector.shape_cast %290 : vector<8xf32> to vector<8x1xf32>
    %292 = vector.broadcast %291 : vector<8x1xf32> to vector<8x8xf32>
    %293 = arith.subf %289, %292 : vector<8x8xf32>
    %294 = math.exp %293 : vector<8x8xf32>
    %cst_131 = arith.constant dense<0.000000e+00> : vector<8xf32>
    %295 = vector.multi_reduction <add>, %294, %cst_131 [1] : vector<8x8xf32> to vector<8xf32>
    %296 = vector.shape_cast %295 : vector<8xf32> to vector<8x1xf32>
    %297 = tpu.reciprocal %296 {approx = true} : vector<8x1xf32> -> vector<8x1xf32>
    %298 = vector.broadcast %297 : vector<8x1xf32> to vector<8x8xf32>
    %299 = arith.mulf %294, %298 : vector<8x8xf32>
    %cst_132 = arith.constant dense<0.000000e+00> : vector<8x8xf32>
    %300 = tpu.matmul %299, %285, %cst_132 {dimension_numbers = #tpu.dot_dimension_numbers<[1], [0], [0], [1], [0, 0, 1, 1], [], []>} : vector<8x8xf32>, vector<8x8xf32>, vector<8x8xf32> -> vector<8x8xf32>
    %c0_133 = arith.constant 0 : index
    %c0_134 = arith.constant 0 : index
    %301 = vector.load %arg21[%c0_133, %c0_134] : memref<16x32xf32, #tpu.memory_space<vmem>>, vector<8x8xf32>
    tpu.vector_store %arg21[%c0_133, %c0_134], %300 {strides = array<i32>} : memref<16x32xf32, #tpu.memory_space<vmem>>, vector<8x8xf32>,
    %302 = vector.extract_strided_slice %280 {offsets = [0, 8], sizes = [8, 8], strides = [1, 1]} : vector<16x32xf32> to vector<8x8xf32>
    %303 = vector.extract_strided_slice %281 {offsets = [0, 8], sizes = [8, 8], strides = [1, 1]} : vector<16x32xf32> to vector<8x8xf32>
    %304 = vector.extract_strided_slice %282 {offsets = [0, 8], sizes = [8, 8], strides = [1, 1]} : vector<16x32xf32> to vector<8x8xf32>
    %305 = tpu.transpose %303, [1, 0] : vector<8x8xf32> -> vector<8x8xf32>
    %cst_135 = arith.constant dense<0.000000e+00> : vector<8x8xf32>
    %306 = tpu.matmul %302, %305, %cst_135 {dimension_numbers = #tpu.dot_dimension_numbers<[1], [0], [0], [1], [0, 0, 1, 1], [], []>} : vector<8x8xf32>, vector<8x8xf32>, vector<8x8xf32> -> vector<8x8xf32>
    %cst_136 = arith.constant 0.353553385 : f32
    %307 = vector.broadcast %cst_136 : f32 to vector<8x8xf32>
    %308 = arith.mulf %306, %307 : vector<8x8xf32>
    %cst_137 = arith.constant dense<0xFF800000> : vector<8xf32>
    %309 = vector.multi_reduction <maximumf>, %308, %cst_137 [1] : vector<8x8xf32> to vector<8xf32>
    %310 = vector.shape_cast %309 : vector<8xf32> to vector<8x1xf32>
    %311 = vector.broadcast %310 : vector<8x1xf32> to vector<8x8xf32>
    %312 = arith.subf %308, %311 : vector<8x8xf32>
    %313 = math.exp %312 : vector<8x8xf32>
    %cst_138 = arith.constant dense<0.000000e+00> : vector<8xf32>
    %314 = vector.multi_reduction <add>, %313, %cst_138 [1] : vector<8x8xf32> to vector<8xf32>
    %315 = vector.shape_cast %314 : vector<8xf32> to vector<8x1xf32>
    %316 = tpu.reciprocal %315 {approx = true} : vector<8x1xf32> -> vector<8x1xf32>
    %317 = vector.broadcast %316 : vector<8x1xf32> to vector<8x8xf32>
    %318 = arith.mulf %313, %317 : vector<8x8xf32>
    %cst_139 = arith.constant dense<0.000000e+00> : vector<8x8xf32>
    %319 = tpu.matmul %318, %304, %cst_139 {dimension_numbers = #tpu.dot_dimension_numbers<[1], [0], [0], [1], [0, 0, 1, 1], [], []>} : vector<8x8xf32>, vector<8x8xf32>, vector<8x8xf32> -> vector<8x8xf32>
    %c0_140 = arith.constant 0 : index
    %c8_141 = arith.constant 8 : index
    %320 = vector.load %arg21[%c0_140, %c8_141] : memref<16x32xf32, #tpu.memory_space<vmem>>, vector<8x8xf32>
    tpu.vector_store %arg21[%c0_140, %c8_141], %319 {strides = array<i32>} : memref<16x32xf32, #tpu.memory_space<vmem>>, vector<8x8xf32>,
    %321 = vector.extract_strided_slice %280 {offsets = [0, 16], sizes = [8, 8], strides = [1, 1]} : vector<16x32xf32> to vector<8x8xf32>
    %322 = vector.extract_strided_slice %281 {offsets = [0, 16], sizes = [8, 8], strides = [1, 1]} : vector<16x32xf32> to vector<8x8xf32>
    %323 = vector.extract_strided_slice %282 {offsets = [0, 16], sizes = [8, 8], strides = [1, 1]} : vector<16x32xf32> to vector<8x8xf32>
    %324 = tpu.transpose %322, [1, 0] : vector<8x8xf32> -> vector<8x8xf32>
    %cst_142 = arith.constant dense<0.000000e+00> : vector<8x8xf32>
    %325 = tpu.matmul %321, %324, %cst_142 {dimension_numbers = #tpu.dot_dimension_numbers<[1], [0], [0], [1], [0, 0, 1, 1], [], []>} : vector<8x8xf32>, vector<8x8xf32>, vector<8x8xf32> -> vector<8x8xf32>
    %cst_143 = arith.constant 0.353553385 : f32
    %326 = vector.broadcast %cst_143 : f32 to vector<8x8xf32>
    %327 = arith.mulf %325, %326 : vector<8x8xf32>
    %cst_144 = arith.constant dense<0xFF800000> : vector<8xf32>
    %328 = vector.multi_reduction <maximumf>, %327, %cst_144 [1] : vector<8x8xf32> to vector<8xf32>
    %329 = vector.shape_cast %328 : vector<8xf32> to vector<8x1xf32>
    %330 = vector.broadcast %329 : vector<8x1xf32> to vector<8x8xf32>
    %331 = arith.subf %327, %330 : vector<8x8xf32>
    %332 = math.exp %331 : vector<8x8xf32>
    %cst_145 = arith.constant dense<0.000000e+00> : vector<8xf32>
    %333 = vector.multi_reduction <add>, %332, %cst_145 [1] : vector<8x8xf32> to vector<8xf32>
    %334 = vector.shape_cast %333 : vector<8xf32> to vector<8x1xf32>
    %335 = tpu.reciprocal %334 {approx = true} : vector<8x1xf32> -> vector<8x1xf32>
    %336 = vector.broadcast %335 : vector<8x1xf32> to vector<8x8xf32>
    %337 = arith.mulf %332, %336 : vector<8x8xf32>
    %cst_146 = arith.constant dense<0.000000e+00> : vector<8x8xf32>
    %338 = tpu.matmul %337, %323, %cst_146 {dimension_numbers = #tpu.dot_dimension_numbers<[1], [0], [0], [1], [0, 0, 1, 1], [], []>} : vector<8x8xf32>, vector<8x8xf32>, vector<8x8xf32> -> vector<8x8xf32>
    %c0_147 = arith.constant 0 : index
    %c16_148 = arith.constant 16 : index
    %339 = vector.load %arg21[%c0_147, %c16_148] : memref<16x32xf32, #tpu.memory_space<vmem>>, vector<8x8xf32>
    tpu.vector_store %arg21[%c0_147, %c16_148], %338 {strides = array<i32>} : memref<16x32xf32, #tpu.memory_space<vmem>>, vector<8x8xf32>,
    %340 = vector.extract_strided_slice %280 {offsets = [0, 24], sizes = [8, 8], strides = [1, 1]} : vector<16x32xf32> to vector<8x8xf32>
    %341 = vector.extract_strided_slice %281 {offsets = [0, 24], sizes = [8, 8], strides = [1, 1]} : vector<16x32xf32> to vector<8x8xf32>
    %342 = vector.extract_strided_slice %282 {offsets = [0, 24], sizes = [8, 8], strides = [1, 1]} : vector<16x32xf32> to vector<8x8xf32>
    %343 = tpu.transpose %341, [1, 0] : vector<8x8xf32> -> vector<8x8xf32>
    %cst_149 = arith.constant dense<0.000000e+00> : vector<8x8xf32>
    %344 = tpu.matmul %340, %343, %cst_149 {dimension_numbers = #tpu.dot_dimension_numbers<[1], [0], [0], [1], [0, 0, 1, 1], [], []>} : vector<8x8xf32>, vector<8x8xf32>, vector<8x8xf32> -> vector<8x8xf32>
    %cst_150 = arith.constant 0.353553385 : f32
    %345 = vector.broadcast %cst_150 : f32 to vector<8x8xf32>
    %346 = arith.mulf %344, %345 : vector<8x8xf32>
    %cst_151 = arith.constant dense<0xFF800000> : vector<8xf32>
    %347 = vector.multi_reduction <maximumf>, %346, %cst_151 [1] : vector<8x8xf32> to vector<8xf32>
    %348 = vector.shape_cast %347 : vector<8xf32> to vector<8x1xf32>
    %349 = vector.broadcast %348 : vector<8x1xf32> to vector<8x8xf32>
    %350 = arith.subf %346, %349 : vector<8x8xf32>
    %351 = math.exp %350 : vector<8x8xf32>
    %cst_152 = arith.constant dense<0.000000e+00> : vector<8xf32>
    %352 = vector.multi_reduction <add>, %351, %cst_152 [1] : vector<8x8xf32> to vector<8xf32>
    %353 = vector.shape_cast %352 : vector<8xf32> to vector<8x1xf32>
    %354 = tpu.reciprocal %353 {approx = true} : vector<8x1xf32> -> vector<8x1xf32>
    %355 = vector.broadcast %354 : vector<8x1xf32> to vector<8x8xf32>
    %356 = arith.mulf %351, %355 : vector<8x8xf32>
    %cst_153 = arith.constant dense<0.000000e+00> : vector<8x8xf32>
    %357 = tpu.matmul %356, %342, %cst_153 {dimension_numbers = #tpu.dot_dimension_numbers<[1], [0], [0], [1], [0, 0, 1, 1], [], []>} : vector<8x8xf32>, vector<8x8xf32>, vector<8x8xf32> -> vector<8x8xf32>
    %c0_154 = arith.constant 0 : index
    %c24_155 = arith.constant 24 : index
    %358 = vector.load %arg21[%c0_154, %c24_155] : memref<16x32xf32, #tpu.memory_space<vmem>>, vector<8x8xf32>
    tpu.vector_store %arg21[%c0_154, %c24_155], %357 {strides = array<i32>} : memref<16x32xf32, #tpu.memory_space<vmem>>, vector<8x8xf32>,
    %359 = vector.extract_strided_slice %280 {offsets = [8, 0], sizes = [8, 8], strides = [1, 1]} : vector<16x32xf32> to vector<8x8xf32>
    %360 = vector.extract_strided_slice %281 {offsets = [8, 0], sizes = [8, 8], strides = [1, 1]} : vector<16x32xf32> to vector<8x8xf32>
    %361 = vector.extract_strided_slice %282 {offsets = [8, 0], sizes = [8, 8], strides = [1, 1]} : vector<16x32xf32> to vector<8x8xf32>
    %362 = tpu.transpose %360, [1, 0] : vector<8x8xf32> -> vector<8x8xf32>
    %cst_156 = arith.constant dense<0.000000e+00> : vector<8x8xf32>
    %363 = tpu.matmul %359, %362, %cst_156 {dimension_numbers = #tpu.dot_dimension_numbers<[1], [0], [0], [1], [0, 0, 1, 1], [], []>} : vector<8x8xf32>, vector<8x8xf32>, vector<8x8xf32> -> vector<8x8xf32>
    %cst_157 = arith.constant 0.353553385 : f32
    %364 = vector.broadcast %cst_157 : f32 to vector<8x8xf32>
    %365 = arith.mulf %363, %364 : vector<8x8xf32>
    %cst_158 = arith.constant dense<0xFF800000> : vector<8xf32>
    %366 = vector.multi_reduction <maximumf>, %365, %cst_158 [1] : vector<8x8xf32> to vector<8xf32>
    %367 = vector.shape_cast %366 : vector<8xf32> to vector<8x1xf32>
    %368 = vector.broadcast %367 : vector<8x1xf32> to vector<8x8xf32>
    %369 = arith.subf %365, %368 : vector<8x8xf32>
    %370 = math.exp %369 : vector<8x8xf32>
    %cst_159 = arith.constant dense<0.000000e+00> : vector<8xf32>
    %371 = vector.multi_reduction <add>, %370, %cst_159 [1] : vector<8x8xf32> to vector<8xf32>
    %372 = vector.shape_cast %371 : vector<8xf32> to vector<8x1xf32>
    %373 = tpu.reciprocal %372 {approx = true} : vector<8x1xf32> -> vector<8x1xf32>
    %374 = vector.broadcast %373 : vector<8x1xf32> to vector<8x8xf32>
    %375 = arith.mulf %370, %374 : vector<8x8xf32>
    %cst_160 = arith.constant dense<0.000000e+00> : vector<8x8xf32>
    %376 = tpu.matmul %375, %361, %cst_160 {dimension_numbers = #tpu.dot_dimension_numbers<[1], [0], [0], [1], [0, 0, 1, 1], [], []>} : vector<8x8xf32>, vector<8x8xf32>, vector<8x8xf32> -> vector<8x8xf32>
    %c8_161 = arith.constant 8 : index
    %c0_162 = arith.constant 0 : index
    %377 = vector.load %arg21[%c8_161, %c0_162] : memref<16x32xf32, #tpu.memory_space<vmem>>, vector<8x8xf32>
    tpu.vector_store %arg21[%c8_161, %c0_162], %376 {strides = array<i32>} : memref<16x32xf32, #tpu.memory_space<vmem>>, vector<8x8xf32>,
    %378 = vector.extract_strided_slice %280 {offsets = [8, 8], sizes = [8, 8], strides = [1, 1]} : vector<16x32xf32> to vector<8x8xf32>
    %379 = vector.extract_strided_slice %281 {offsets = [8, 8], sizes = [8, 8], strides = [1, 1]} : vector<16x32xf32> to vector<8x8xf32>
    %380 = vector.extract_strided_slice %282 {offsets = [8, 8], sizes = [8, 8], strides = [1, 1]} : vector<16x32xf32> to vector<8x8xf32>
    %381 = tpu.transpose %379, [1, 0] : vector<8x8xf32> -> vector<8x8xf32>
    %cst_163 = arith.constant dense<0.000000e+00> : vector<8x8xf32>
    %382 = tpu.matmul %378, %381, %cst_163 {dimension_numbers = #tpu.dot_dimension_numbers<[1], [0], [0], [1], [0, 0, 1, 1], [], []>} : vector<8x8xf32>, vector<8x8xf32>, vector<8x8xf32> -> vector<8x8xf32>
    %cst_164 = arith.constant 0.353553385 : f32
    %383 = vector.broadcast %cst_164 : f32 to vector<8x8xf32>
    %384 = arith.mulf %382, %383 : vector<8x8xf32>
    %cst_165 = arith.constant dense<0xFF800000> : vector<8xf32>
    %385 = vector.multi_reduction <maximumf>, %384, %cst_165 [1] : vector<8x8xf32> to vector<8xf32>
    %386 = vector.shape_cast %385 : vector<8xf32> to vector<8x1xf32>
    %387 = vector.broadcast %386 : vector<8x1xf32> to vector<8x8xf32>
    %388 = arith.subf %384, %387 : vector<8x8xf32>
    %389 = math.exp %388 : vector<8x8xf32>
    %cst_166 = arith.constant dense<0.000000e+00> : vector<8xf32>
    %390 = vector.multi_reduction <add>, %389, %cst_166 [1] : vector<8x8xf32> to vector<8xf32>
    %391 = vector.shape_cast %390 : vector<8xf32> to vector<8x1xf32>
    %392 = tpu.reciprocal %391 {approx = true} : vector<8x1xf32> -> vector<8x1xf32>
    %393 = vector.broadcast %392 : vector<8x1xf32> to vector<8x8xf32>
    %394 = arith.mulf %389, %393 : vector<8x8xf32>
    %cst_167 = arith.constant dense<0.000000e+00> : vector<8x8xf32>
    %395 = tpu.matmul %394, %380, %cst_167 {dimension_numbers = #tpu.dot_dimension_numbers<[1], [0], [0], [1], [0, 0, 1, 1], [], []>} : vector<8x8xf32>, vector<8x8xf32>, vector<8x8xf32> -> vector<8x8xf32>
    %c8_168 = arith.constant 8 : index
    %c8_169 = arith.constant 8 : index
    %396 = vector.load %arg21[%c8_168, %c8_169] : memref<16x32xf32, #tpu.memory_space<vmem>>, vector<8x8xf32>
    tpu.vector_store %arg21[%c8_168, %c8_169], %395 {strides = array<i32>} : memref<16x32xf32, #tpu.memory_space<vmem>>, vector<8x8xf32>,
    %397 = vector.extract_strided_slice %280 {offsets = [8, 16], sizes = [8, 8], strides = [1, 1]} : vector<16x32xf32> to vector<8x8xf32>
    %398 = vector.extract_strided_slice %281 {offsets = [8, 16], sizes = [8, 8], strides = [1, 1]} : vector<16x32xf32> to vector<8x8xf32>
    %399 = vector.extract_strided_slice %282 {offsets = [8, 16], sizes = [8, 8], strides = [1, 1]} : vector<16x32xf32> to vector<8x8xf32>
    %400 = tpu.transpose %398, [1, 0] : vector<8x8xf32> -> vector<8x8xf32>
    %cst_170 = arith.constant dense<0.000000e+00> : vector<8x8xf32>
    %401 = tpu.matmul %397, %400, %cst_170 {dimension_numbers = #tpu.dot_dimension_numbers<[1], [0], [0], [1], [0, 0, 1, 1], [], []>} : vector<8x8xf32>, vector<8x8xf32>, vector<8x8xf32> -> vector<8x8xf32>
    %cst_171 = arith.constant 0.353553385 : f32
    %402 = vector.broadcast %cst_171 : f32 to vector<8x8xf32>
    %403 = arith.mulf %401, %402 : vector<8x8xf32>
    %cst_172 = arith.constant dense<0xFF800000> : vector<8xf32>
    %404 = vector.multi_reduction <maximumf>, %403, %cst_172 [1] : vector<8x8xf32> to vector<8xf32>
    %405 = vector.shape_cast %404 : vector<8xf32> to vector<8x1xf32>
    %406 = vector.broadcast %405 : vector<8x1xf32> to vector<8x8xf32>
    %407 = arith.subf %403, %406 : vector<8x8xf32>
    %408 = math.exp %407 : vector<8x8xf32>
    %cst_173 = arith.constant dense<0.000000e+00> : vector<8xf32>
    %409 = vector.multi_reduction <add>, %408, %cst_173 [1] : vector<8x8xf32> to vector<8xf32>
    %410 = vector.shape_cast %409 : vector<8xf32> to vector<8x1xf32>
    %411 = tpu.reciprocal %410 {approx = true} : vector<8x1xf32> -> vector<8x1xf32>
    %412 = vector.broadcast %411 : vector<8x1xf32> to vector<8x8xf32>
    %413 = arith.mulf %408, %412 : vector<8x8xf32>
    %cst_174 = arith.constant dense<0.000000e+00> : vector<8x8xf32>
    %414 = tpu.matmul %413, %399, %cst_174 {dimension_numbers = #tpu.dot_dimension_numbers<[1], [0], [0], [1], [0, 0, 1, 1], [], []>} : vector<8x8xf32>, vector<8x8xf32>, vector<8x8xf32> -> vector<8x8xf32>
    %c8_175 = arith.constant 8 : index
    %c16_176 = arith.constant 16 : index
    %415 = vector.load %arg21[%c8_175, %c16_176] : memref<16x32xf32, #tpu.memory_space<vmem>>, vector<8x8xf32>
    tpu.vector_store %arg21[%c8_175, %c16_176], %414 {strides = array<i32>} : memref<16x32xf32, #tpu.memory_space<vmem>>, vector<8x8xf32>,
    %416 = vector.extract_strided_slice %280 {offsets = [8, 24], sizes = [8, 8], strides = [1, 1]} : vector<16x32xf32> to vector<8x8xf32>
    %417 = vector.extract_strided_slice %281 {offsets = [8, 24], sizes = [8, 8], strides = [1, 1]} : vector<16x32xf32> to vector<8x8xf32>
    %418 = vector.extract_strided_slice %282 {offsets = [8, 24], sizes = [8, 8], strides = [1, 1]} : vector<16x32xf32> to vector<8x8xf32>
    %419 = tpu.transpose %417, [1, 0] : vector<8x8xf32> -> vector<8x8xf32>
    %cst_177 = arith.constant dense<0.000000e+00> : vector<8x8xf32>
    %420 = tpu.matmul %416, %419, %cst_177 {dimension_numbers = #tpu.dot_dimension_numbers<[1], [0], [0], [1], [0, 0, 1, 1], [], []>} : vector<8x8xf32>, vector<8x8xf32>, vector<8x8xf32> -> vector<8x8xf32>
    %cst_178 = arith.constant 0.353553385 : f32
    %421 = vector.broadcast %cst_178 : f32 to vector<8x8xf32>
    %422 = arith.mulf %420, %421 : vector<8x8xf32>
    %cst_179 = arith.constant dense<0xFF800000> : vector<8xf32>
    %423 = vector.multi_reduction <maximumf>, %422, %cst_179 [1] : vector<8x8xf32> to vector<8xf32>
    %424 = vector.shape_cast %423 : vector<8xf32> to vector<8x1xf32>
    %425 = vector.broadcast %424 : vector<8x1xf32> to vector<8x8xf32>
    %426 = arith.subf %422, %425 : vector<8x8xf32>
    %427 = math.exp %426 : vector<8x8xf32>
    %cst_180 = arith.constant dense<0.000000e+00> : vector<8xf32>
    %428 = vector.multi_reduction <add>, %427, %cst_180 [1] : vector<8x8xf32> to vector<8xf32>
    %429 = vector.shape_cast %428 : vector<8xf32> to vector<8x1xf32>
    %430 = tpu.reciprocal %429 {approx = true} : vector<8x1xf32> -> vector<8x1xf32>
    %431 = vector.broadcast %430 : vector<8x1xf32> to vector<8x8xf32>
    %432 = arith.mulf %427, %431 : vector<8x8xf32>
    %cst_181 = arith.constant dense<0.000000e+00> : vector<8x8xf32>
    %433 = tpu.matmul %432, %418, %cst_181 {dimension_numbers = #tpu.dot_dimension_numbers<[1], [0], [0], [1], [0, 0, 1, 1], [], []>} : vector<8x8xf32>, vector<8x8xf32>, vector<8x8xf32> -> vector<8x8xf32>
    %c8_182 = arith.constant 8 : index
    %c24_183 = arith.constant 24 : index
    %434 = vector.load %arg21[%c8_182, %c24_183] : memref<16x32xf32, #tpu.memory_space<vmem>>, vector<8x8xf32>
    tpu.vector_store %arg21[%c8_182, %c24_183], %433 {strides = array<i32>} : memref<16x32xf32, #tpu.memory_space<vmem>>, vector<8x8xf32>,
    %c0_184 = arith.constant 0 : index
    %c0_185 = arith.constant 0 : index
    %435 = vector.load %arg21[%c0_184, %c0_185] : memref<16x32xf32, #tpu.memory_space<vmem>>, vector<16x32xf32>
    %c1_186 = arith.constant 1 : index
    %c0_187 = arith.constant 0 : index
    %c0_188 = arith.constant 0 : index
    %436 = vector.load %arg8[%c1_186, %c0_187, %c0_188] : memref<2x32x32xf32, #tpu.memory_space<vmem>>, vector<1x32x32xf32>
    %437 = vector.shape_cast %436 : vector<1x32x32xf32> to vector<32x32xf32>
    %c1_189 = arith.constant 1 : index
    %c0_190 = arith.constant 0 : index
    %c0_191 = arith.constant 0 : index
    %438 = vector.load %arg9[%c1_189, %c0_190, %c0_191] : memref<2x1x32xf32, #tpu.memory_space<vmem>>, vector<1x1x32xf32>
    %439 = vector.shape_cast %438 : vector<1x1x32xf32> to vector<1x32xf32>
    %cst_192 = arith.constant dense<0.000000e+00> : vector<16x32xf32>
    %440 = tpu.matmul %435, %437, %cst_192 {dimension_numbers = #tpu.dot_dimension_numbers<[1], [0], [0], [1], [0, 0, 1, 1], [], []>} : vector<16x32xf32>, vector<32x32xf32>, vector<16x32xf32> -> vector<16x32xf32>
    %441 = vector.broadcast %439 : vector<1x32xf32> to vector<16x32xf32>
    %442 = arith.addf %440, %441 : vector<16x32xf32>
    %443 = arith.addf %272, %442 : vector<16x32xf32>
    %c1_193 = arith.constant 1 : index
    %c0_194 = arith.constant 0 : index
    %c0_195 = arith.constant 0 : index
    %444 = vector.load %arg10[%c1_193, %c0_194, %c0_195] : memref<2x1x32xf32, #tpu.memory_space<vmem>>, vector<1x1x32xf32>
    %445 = vector.shape_cast %444 : vector<1x1x32xf32> to vector<1x32xf32>
    %c1_196 = arith.constant 1 : index
    %c0_197 = arith.constant 0 : index
    %c0_198 = arith.constant 0 : index
    %446 = vector.load %arg11[%c1_196, %c0_197, %c0_198] : memref<2x1x32xf32, #tpu.memory_space<vmem>>, vector<1x1x32xf32>
    %447 = vector.shape_cast %446 : vector<1x1x32xf32> to vector<1x32xf32>
    %cst_199 = arith.constant dense<0.000000e+00> : vector<16xf32>
    %448 = vector.multi_reduction <add>, %443, %cst_199 [1] : vector<16x32xf32> to vector<16xf32>
    %449 = vector.shape_cast %448 : vector<16xf32> to vector<16x1xf32>
    %cst_200 = arith.constant 3.200000e+01 : f32
    %450 = vector.broadcast %cst_200 : f32 to vector<16x1xf32>
    %451 = arith.divf %449, %450 : vector<16x1xf32>
    %452 = vector.broadcast %451 : vector<16x1xf32> to vector<16x32xf32>
    %453 = arith.subf %443, %452 : vector<16x32xf32>
    %454 = arith.mulf %453, %453 : vector<16x32xf32>
    %cst_201 = arith.constant dense<0.000000e+00> : vector<16xf32>
    %455 = vector.multi_reduction <add>, %454, %cst_201 [1] : vector<16x32xf32> to vector<16xf32>
    %456 = vector.shape_cast %455 : vector<16xf32> to vector<16x1xf32>
    %cst_202 = arith.constant 3.200000e+01 : f32
    %457 = vector.broadcast %cst_202 : f32 to vector<16x1xf32>
    %458 = arith.divf %456, %457 : vector<16x1xf32>
    %459 = vector.broadcast %451 : vector<16x1xf32> to vector<16x32xf32>
    %460 = arith.subf %443, %459 : vector<16x32xf32>
    %cst_203 = arith.constant 9.99999974E-6 : f32
    %461 = vector.broadcast %cst_203 : f32 to vector<16x1xf32>
    %462 = arith.addf %458, %461 : vector<16x1xf32>
    %463 = math.rsqrt %462 : vector<16x1xf32>
    %464 = vector.broadcast %463 : vector<16x1xf32> to vector<16x32xf32>
    %465 = arith.mulf %460, %464 : vector<16x32xf32>
    %466 = vector.broadcast %445 : vector<1x32xf32> to vector<16x32xf32>
    %467 = arith.mulf %465, %466 : vector<16x32xf32>
    %468 = vector.broadcast %447 : vector<1x32xf32> to vector<16x32xf32>
    %469 = arith.addf %467, %468 : vector<16x32xf32>
    %c1_204 = arith.constant 1 : index
    %c0_205 = arith.constant 0 : index
    %c0_206 = arith.constant 0 : index
    %470 = vector.load %arg12[%c1_204, %c0_205, %c0_206] : memref<2x32x64xf32, #tpu.memory_space<vmem>>, vector<1x32x64xf32>
    %471 = vector.shape_cast %470 : vector<1x32x64xf32> to vector<32x64xf32>
    %c1_207 = arith.constant 1 : index
    %c0_208 = arith.constant 0 : index
    %c0_209 = arith.constant 0 : index
    %472 = vector.load %arg13[%c1_207, %c0_208, %c0_209] : memref<2x1x64xf32, #tpu.memory_space<vmem>>, vector<1x1x64xf32>
    %473 = vector.shape_cast %472 : vector<1x1x64xf32> to vector<1x64xf32>
    %cst_210 = arith.constant dense<0.000000e+00> : vector<16x64xf32>
    %474 = tpu.matmul %469, %471, %cst_210 {dimension_numbers = #tpu.dot_dimension_numbers<[1], [0], [0], [1], [0, 0, 1, 1], [], []>} : vector<16x32xf32>, vector<32x64xf32>, vector<16x64xf32> -> vector<16x64xf32>
    %475 = vector.broadcast %473 : vector<1x64xf32> to vector<16x64xf32>
    %476 = arith.addf %474, %475 : vector<16x64xf32>
    %cst_211 = arith.constant 0.000000e+00 : f32
    %477 = vector.broadcast %cst_211 : f32 to vector<16x64xf32>
    %478 = arith.maximumf %476, %477 : vector<16x64xf32>
    %c1_212 = arith.constant 1 : index
    %c0_213 = arith.constant 0 : index
    %c0_214 = arith.constant 0 : index
    %479 = vector.load %arg14[%c1_212, %c0_213, %c0_214] : memref<2x64x32xf32, #tpu.memory_space<vmem>>, vector<1x64x32xf32>
    %480 = vector.shape_cast %479 : vector<1x64x32xf32> to vector<64x32xf32>
    %c1_215 = arith.constant 1 : index
    %c0_216 = arith.constant 0 : index
    %c0_217 = arith.constant 0 : index
    %481 = vector.load %arg15[%c1_215, %c0_216, %c0_217] : memref<2x1x32xf32, #tpu.memory_space<vmem>>, vector<1x1x32xf32>
    %482 = vector.shape_cast %481 : vector<1x1x32xf32> to vector<1x32xf32>
    %cst_218 = arith.constant dense<0.000000e+00> : vector<16x32xf32>
    %483 = tpu.matmul %478, %480, %cst_218 {dimension_numbers = #tpu.dot_dimension_numbers<[1], [0], [0], [1], [0, 0, 1, 1], [], []>} : vector<16x64xf32>, vector<64x32xf32>, vector<16x32xf32> -> vector<16x32xf32>
    %484 = vector.broadcast %482 : vector<1x32xf32> to vector<16x32xf32>
    %485 = arith.addf %483, %484 : vector<16x32xf32>
    %486 = arith.addf %469, %485 : vector<16x32xf32>
    %c1_219 = arith.constant 1 : index
    %c0_220 = arith.constant 0 : index
    %c0_221 = arith.constant 0 : index
    %487 = vector.load %arg16[%c1_219, %c0_220, %c0_221] : memref<2x1x32xf32, #tpu.memory_space<vmem>>, vector<1x1x32xf32>
    %488 = vector.shape_cast %487 : vector<1x1x32xf32> to vector<1x32xf32>
    %c1_222 = arith.constant 1 : index
    %c0_223 = arith.constant 0 : index
    %c0_224 = arith.constant 0 : index
    %489 = vector.load %arg17[%c1_222, %c0_223, %c0_224] : memref<2x1x32xf32, #tpu.memory_space<vmem>>, vector<1x1x32xf32>
    %490 = vector.shape_cast %489 : vector<1x1x32xf32> to vector<1x32xf32>
    %cst_225 = arith.constant dense<0.000000e+00> : vector<16xf32>
    %491 = vector.multi_reduction <add>, %486, %cst_225 [1] : vector<16x32xf32> to vector<16xf32>
    %492 = vector.shape_cast %491 : vector<16xf32> to vector<16x1xf32>
    %cst_226 = arith.constant 3.200000e+01 : f32
    %493 = vector.broadcast %cst_226 : f32 to vector<16x1xf32>
    %494 = arith.divf %492, %493 : vector<16x1xf32>
    %495 = vector.broadcast %494 : vector<16x1xf32> to vector<16x32xf32>
    %496 = arith.subf %486, %495 : vector<16x32xf32>
    %497 = arith.mulf %496, %496 : vector<16x32xf32>
    %cst_227 = arith.constant dense<0.000000e+00> : vector<16xf32>
    %498 = vector.multi_reduction <add>, %497, %cst_227 [1] : vector<16x32xf32> to vector<16xf32>
    %499 = vector.shape_cast %498 : vector<16xf32> to vector<16x1xf32>
    %cst_228 = arith.constant 3.200000e+01 : f32
    %500 = vector.broadcast %cst_228 : f32 to vector<16x1xf32>
    %501 = arith.divf %499, %500 : vector<16x1xf32>
    %502 = vector.broadcast %494 : vector<16x1xf32> to vector<16x32xf32>
    %503 = arith.subf %486, %502 : vector<16x32xf32>
    %cst_229 = arith.constant 9.99999974E-6 : f32
    %504 = vector.broadcast %cst_229 : f32 to vector<16x1xf32>
    %505 = arith.addf %501, %504 : vector<16x1xf32>
    %506 = math.rsqrt %505 : vector<16x1xf32>
    %507 = vector.broadcast %506 : vector<16x1xf32> to vector<16x32xf32>
    %508 = arith.mulf %503, %507 : vector<16x32xf32>
    %509 = vector.broadcast %488 : vector<1x32xf32> to vector<16x32xf32>
    %510 = arith.mulf %508, %509 : vector<16x32xf32>
    %511 = vector.broadcast %490 : vector<1x32xf32> to vector<16x32xf32>
    %512 = arith.addf %510, %511 : vector<16x32xf32>
    %c0_230 = arith.constant 0 : index
    %c0_231 = arith.constant 0 : index
    %513 = vector.load %arg18[%c0_230, %c0_231] : memref<32x64xf32, #tpu.memory_space<vmem>>, vector<32x64xf32>
    %c0_232 = arith.constant 0 : index
    %c0_233 = arith.constant 0 : index
    %514 = vector.load %arg19[%c0_232, %c0_233] : memref<1x64xf32, #tpu.memory_space<vmem>>, vector<1x64xf32>
    %cst_234 = arith.constant dense<0.000000e+00> : vector<16x64xf32>
    %515 = tpu.matmul %512, %513, %cst_234 {dimension_numbers = #tpu.dot_dimension_numbers<[1], [0], [0], [1], [0, 0, 1, 1], [], []>} : vector<16x32xf32>, vector<32x64xf32>, vector<16x64xf32> -> vector<16x64xf32>
    %516 = vector.broadcast %514 : vector<1x64xf32> to vector<16x64xf32>
    %517 = arith.addf %515, %516 : vector<16x64xf32>
    %c0_235 = arith.constant 0 : index
    %c0_236 = arith.constant 0 : index
    %518 = vector.load %arg20[%c0_235, %c0_236] : memref<16x64xf32, #tpu.memory_space<vmem>>, vector<16x64xf32>
    tpu.vector_store %arg20[%c0_235, %c0_236], %517 {strides = array<i32>} : memref<16x64xf32, #tpu.memory_space<vmem>>, vector<16x64xf32>,
    return
  }
}

</mosaic_0001>

<bundles_post_ra>
// kernel: audio_encoder_forward.1
= control target key start
LH: loop header
LB: loop body
LE: loop exit
PB: predicated region body
PF: predicated region fallthrough
CT: control target
= control target key end

     0   :  { %s5635_s0 = inlined_call_operand.hbm [shape: f32[16,16], index: 0, kind: input, shape index: {}]   ;;  %s5636_s1 = inlined_call_operand.vmem [shape: f32[8,32], index: 1, kind: input, shape index: {}]   ;;  %s5637_s2 = inlined_call_operand.hbm [shape: f32[16,32], index: 2, kind: input, shape index: {}]   ;;  %s5638_s3 = inlined_call_operand.hbm [shape: f32[1,32], index: 3, kind: input, shape index: {}]   ;;  %s5639_s4 = inlined_call_operand.vmem [shape: f32[1,32], index: 4, kind: input, shape index: {}]   ;;  %s5640_s5 = inlined_call_operand.vmem [shape: f32[1,32], index: 5, kind: input, shape index: {}]   ;;  %s5641_s6 = inlined_call_operand.vmem [shape: f32[2,32,96], index: 6, kind: input, shape index: {}]   ;;  %s5642_s7 = inlined_call_operand.vmem [shape: f32[2,1,96], index: 7, kind: input, shape index: {}]   ;;  %s5643_s8 = inlined_call_operand.vmem [shape: f32[2,32,32], index: 8, kind: input, shape index: {}]   ;;  %s5644_s9 = inlined_call_operand.hbm [shape: f32[2,1,32], index: 9, kind: input, shape index: {}]   ;;  %s5645_s10 = inlined_call_operand.vmem [shape: f32[2,1,32], index: 10, kind: input, shape index: {}]   ;;  %s5646_s11 = inlined_call_operand.vmem [shape: f32[2,1,32], index: 11, kind: input, shape index: {}]   ;;  %s5647_s12 = inlined_call_operand.vmem [shape: f32[2,32,64], index: 12, kind: input, shape index: {}]   ;;  %s5648_s13 = inlined_call_operand.hbm [shape: f32[2,1,64], index: 13, kind: input, shape index: {}]   ;;  %s5649_s14 = inlined_call_operand.vmem [shape: f32[2,64,32], index: 14, kind: input, shape index: {}]   ;;  %s5650_s15 = inlined_call_operand.hbm [shape: f32[2,1,32], index: 15, kind: input, shape index: {}]   ;;  %s5651_s16 = inlined_call_operand.vmem [shape: f32[2,1,32], index: 16, kind: input, shape index: {}]   ;;  %s5652_s17 = inlined_call_operand.vmem [shape: f32[2,1,32], index: 17, kind: input, shape index: {}]   ;;  %s5653_s18 = inlined_call_operand.hbm [shape: f32[32,64], index: 18, kind: input, shape index: {}]   ;;  %s5654_s19 = inlined_call_operand.vmem [shape: f32[1,64], index: 19, kind: input, shape index: {}]   ;;  %s5655_s20 = inlined_call_operand.hbm [shape: f32[16,64], index: 20, kind: output, shape index: {}]  }
   0x1   :  { %5661 = sst [smem:[#allocation21_spill]] %s5635_s0 }
   0x2   :  { %5662 = sst [smem:[#allocation22_spill]] %s5636_s1 }
   0x3   :  { %5663 = sst [smem:[#allocation23_spill]] %s5637_s2 }
   0x4   :  { %5664 = sst [smem:[#allocation24_spill]] %s5638_s3 }
   0x5   :  { %5665 = sst [smem:[#allocation25_spill]] %s5639_s4 }
   0x6   :  { %25 = vsyncpa [#allocation4], 0 }
   0x7   :  { %26 = vsyncpa [#allocation7], 0 }
   0x8   :  { %27 = vsyncpa [#allocation10], 0 }
   0x9   :  { %28 = vsyncpa [#allocation13], 0 }
   0xa   :  { %29 = vsyncpa [#allocation5], 0  ;;  %s4889_s1 = smov [#allocation6]   ;;  %s4890_s23 = smov [#allocation9]  }
   0xb   :  { %s49_s22 = sshll.u32 %s4889_s1, 4  ;;  %s81_s24 = sshll.u32 %s4890_s23, 4  ;;  %s50_s22 = int_to_ptr.vmem [resolvable:$true] %s49_s22  ;;  %s82_s24 = int_to_ptr.vmem [resolvable:$true] %s81_s24 }
   0xc   :  { %s4727_s2 = scalar_lea.vmem %s50_s22, 256  ;;  %p4732_p1 = scmp.lt.s32.totalorder %s50_s22, %s50_s22 }
   0xd   :  { %p4728_p0 = scmp.ne.s32.totalorder %s50_s22, %s4727_s2  ;;  %p4733_p2 = scmp.lt.s32.totalorder %s4727_s2, %s4727_s2 }
   0xf   :  { %p4734_p3 = por %p4733_p2, %p4732_p1 }
  0x11   :  { %p4735_p4 = pnand %p4734_p3, %p4728_p0 }
  0x13   :  { %4738 = shalt.err (!%p4735_p4)
}
  0x14   :  { %s5656_s25 = smov 128   ;;  %s4892_s3 = smov 8  }
  0x15   :  { %s5666_s28 = sld [smem:[#allocation23_spill]]  ;;  %s4747_s4 = scalar_lea.vmem %s82_s24, 32 }
  0x16   :  { %p4748_p5 = scmp.ne.s32.totalorder %s82_s24, %s4747_s4  ;;  %p4752_p6 = scmp.lt.s32.totalorder %s82_s24, %s82_s24 }
  0x17   :  { %p4753_p7 = scmp.lt.s32.totalorder %s4747_s4, %s4747_s4 }
  0x19   :  { %p4754_p8 = por %p4753_p7, %p4752_p6 }
  0x1b   :  { %55 = dma.hbm_to_vmem [thread:$0]  %s5666_s28, 256, %s50_s22, [#allocation7], %s5656_s25, %s5656_s25, %s4892_s3  }
  0x1c   :  { %p4755_p9 = pnand %p4754_p8, %p4748_p5 }
  0x1e   :  { %4758 = shalt.err (!%p4755_p9)
}
  0x1f   :  { %s4893_s29 = smov 16   ;;  %s4894_s30 = smov 1  }
  0x20   :  { %87 = dma.hbm_to_vmem [thread:$0]  %s5644_s9, 32, %s82_s24, [#allocation10], %s4893_s29, %s4893_s29, %s4894_s30  }
  0x21   :  { %s4895_s1 = smov [#allocation12]   ;;  %s4896_s2 = smov [#allocation3]  }
  0x22   :  { %s113_s23 = sshll.u32 %s4895_s1, 4  ;;  %s35_s22 = sshll.u32 %s4896_s2, 4  ;;  %s114_s23 = int_to_ptr.vmem [resolvable:$true] %s113_s23  ;;  %s36_s22 = int_to_ptr.vmem [resolvable:$true] %s35_s22 }
  0x23   :  { %s4767_s26 = scalar_lea.vmem %s114_s23, 32  ;;  %p4772_p11 = scmp.lt.s32.totalorder %s114_s23, %s114_s23 }
  0x24   :  { %p4768_p10 = scmp.ne.s32.totalorder %s114_s23, %s4767_s26  ;;  %p4773_p12 = scmp.lt.s32.totalorder %s4767_s26, %s4767_s26 }
  0x26   :  { %p4774_p13 = por %p4773_p12, %p4772_p11 }
  0x28   :  { %p4775_p0 = pnand %p4774_p13, %p4768_p10 }
  0x2a   :  { %4778 = shalt.err (!%p4775_p0)
}
  0x2b   :  { %119 = dma.hbm_to_vmem [thread:$0]  %s5650_s15, 32, %s114_s23, [#allocation13], %s4893_s29, %s4893_s29, %s4894_s30  }
  0x2c   :  { %s4787_s9 = scalar_lea.vmem %s36_s22, 256  ;;  %p4792_p2 = scmp.lt.s32.totalorder %s36_s22, %s36_s22 }
  0x2d   :  { %p4788_p1 = scmp.ne.s32.totalorder %s36_s22, %s4787_s9  ;;  %p4793_p3 = scmp.lt.s32.totalorder %s4787_s9, %s4787_s9 }
  0x2f   :  { %p4794_p4 = por %p4793_p3, %p4792_p2 }
  0x31   :  { %p4795_p5 = pnand %p4794_p4, %p4788_p1 }
  0x33   :  { %4798 = shalt.err (!%p4795_p5)
}
  0x34   :  { %s5667_s0 = sld [smem:[#allocation21_spill]]  ;;  %s4897_s21 = smov [#allocation8]  }
  0x35   :  { %s62_s1 = sshll.u32 %s4897_s21, 4  ;;  %s4898_s2 = smov [#allocation11]   ;;  %s63_s1 = int_to_ptr.vmem [resolvable:$true] %s62_s1 }
  0x36   :  { %s99_s26 = sshll.u32 %s4898_s2, 4  ;;  %s4807_s15 = scalar_lea.vmem %s63_s1, 16  ;;  %s100_s26 = int_to_ptr.vmem [resolvable:$true] %s99_s26 }
  0x37   :  { %p4808_p6 = scmp.ne.s32.totalorder %s63_s1, %s4807_s15  ;;  %s4811_s23 = scalar_lea.vmem %s63_s1, 32 }
  0x38   :  { %p4812_p7 = scmp.lt.s32.totalorder %s63_s1, %s63_s1  ;;  %p4813_p8 = scmp.lt.s32.totalorder %s4811_s23, %s4807_s15 }
  0x3a   :  { %41 = dma.hbm_to_vmem [thread:$0]  %s5667_s0, 256, %s36_s22, [#allocation4], %s5656_s25, %s5656_s25, %s4892_s3  }
  0x3b   :  { %p4814_p9 = por %p4813_p8, %p4812_p7 }
  0x3d   :  { %p4815_p10 = pnand %p4814_p9, %p4808_p6 }
  0x3f   :  { %4818 = shalt.err (!%p4815_p10)
}
  0x40   :  { %s5668_s9 = sld [smem:[#allocation24_spill]]  ;;  %s4827_s24 = scalar_lea.vmem %s100_s26, 32 }
  0x41   :  { %p4828_p11 = scmp.ne.s32.totalorder %s100_s26, %s4827_s24  ;;  %p4832_p12 = scmp.lt.s32.totalorder %s100_s26, %s100_s26 }
  0x42   :  { %p4833_p13 = scmp.lt.s32.totalorder %s4827_s24, %s4827_s24 }
  0x44   :  { %p4834_p0 = por %p4833_p13, %p4832_p12 }
  0x46   :  { %65 = dma.hbm_to_vmem [thread:$0]  %s5668_s9, 16, %s63_s1, [#allocation7]  }
  0x47   :  { %p4835_p1 = pnand %p4834_p0, %p4828_p11 }
  0x49   :  { %4838 = shalt.err (!%p4835_p1)
}
  0x4a   :  { %105 = dma.hbm_to_vmem [thread:$0]  %s5648_s13, 32, %s100_s26, [#allocation10], %s4893_s29, %s4893_s29, %s4894_s30  }
  0x4b   :  { %s4899_s0 = smov [#allocation14]  }
  0x4c   :  { %s129_s21 = sshll.u32 %s4899_s0, 4  ;;  %s130_s21 = int_to_ptr.vmem [resolvable:$true] %s129_s21 }
  0x4d   :  { %s4847_s2 = scalar_lea.vmem %s130_s21, 512  ;;  %p4852_p3 = scmp.lt.s32.totalorder %s130_s21, %s130_s21 }
  0x4e   :  { %p4848_p2 = scmp.ne.s32.totalorder %s130_s21, %s4847_s2  ;;  %p4853_p4 = scmp.lt.s32.totalorder %s4847_s2, %s4847_s2 }
  0x50   :  { %p4854_p5 = por %p4853_p4, %p4852_p3 }
  0x52   :  { %p4855_p6 = pnand %p4854_p5, %p4848_p2 }
  0x54   :  { %4858 = shalt.err (!%p4855_p6)
}
  0x55   :  { %135 = dma.hbm_to_vmem [thread:$0]  %s5653_s18, 512, %s130_s21, [#allocation13], %s5656_s25, %s5656_s25, %s4892_s3  }
  0x56   :  { %4879 = dma.done.wait [#allocation4], 256  }
  0x57   :  { %4880 = vsyncadd [#allocation4], 4294967040 }
  0x58   :  { %4881 = dma.done.wait [#allocation7], 272  }
  0x59   :  { %4882 = vsyncadd [#allocation7], 4294967024 }
  0x5a   :  { %4883 = dma.done.wait [#allocation10], 64  }
  0x5b   :  { %4884 = vsyncadd [#allocation10], 4294967232 }
  0x5c   :  { %4885 = dma.done.wait [#allocation13], 544  }
  0x5d   :  { %4886 = vsyncadd [#allocation13], 4294966752  ;;  %vm170_vm0 = vcmask 130048   ;;  %v162_v0 = vld [vmem:[#allocation6 + $0x8] sm:$0xff]  ;;  %v161_v1 = vld [vmem:[#allocation6] sm:$0xff]  ;;  %s5669_s30 = sld [smem:[#allocation22_spill]] }
  0x5e   :  { %v159_v2 = vld [vmem:[#allocation3] sm:$0xff]  ;;  %4327 = vmatprep.subr.mxu0 %v162_v0  ;;  %v160_v3 = vld [vmem:[#allocation3 + $0x8] sm:$0xff]  ;;  %vm257_vm1 = vcmask 261120   ;;  %v302_v26 = vld [vmem:[%s5641_s6 + $0x8] sm:$0xff]  ;;  %s5670_s2 = sld [smem:[#allocation25_spill]]  ;;  %v4900_v44 = vmov 0.0  }
  0x5f   :  { %4331 = vmatprep.mubr.msk.f32.mxu0 %vm170_vm0, %v159_v2  ;;  %4328 = vmatpush3.msra.mxu0 %v162_v0  ;;  %v4084_v5 = vld [vmem:[#allocation8] ss:$0 sm:$0xff]  ;;  %v304_v24 = vld [vmem:[%s5641_s6 + $0x18] sm:$0xff]  ;;  %v301_v27 = vld [vmem:[%s5641_s6] sm:$0xff]  ;;  %vm4901_vm2 = vmmov 0   ;;  %s4902_s18 = smov 88  }
  0x60   :  { %4329 = vmatprep.subr.mxu0 %v161_v1  ;;  %v303_v25 = vld [vmem:[%s5641_s6 + $0x10] sm:$0xff]  ;;  %4334 = vmatprep.subr.mxu1 %v304_v24  ;;  %v4088_v37 = vld [vmem:[%s5640_s5] ss:$0 sm:$0xff]  ;;  %s4904_s26 = smov 120   ;;  %s4905_s23 = smov 112   ;;  %vm396_vm3 = vcmask 64512  }
  0x61   :  { %4330 = vmatpush3.msra.mxu0 %v161_v1  ;;  %4335 = vmatpush3.msra.mxu1 %v304_v24  ;;  %v4089_v46 = vld [vmem:[%s5642_s7] ss:$0 sm:$0xff]  ;;  %s4906_s27 = smov 80   ;;  %s4907_s28 = smov 104   ;;  %vm730_vm4 = vcmask 130112   ;;  %vm902_vm5 = vcmask 195712  }
  0x62   :  { %4332 = vmatmul.mubr.msk.f32.vlgmr.msra.gmra.mxu0 %vm170_vm0, %v160_v3  ;;  %4336 = vmatprep.subr.mxu1 %v303_v25  ;;  %s4908_s9 = smov 72   ;;  %s4909_s24 = smov 64   ;;  %vm1074_vm6 = vcmask 261312   ;;  %vm2004_vm7 = vcmask 523264  }
  0x63   :  { %v252_v9 = vld [vmem:[%s5669_s30] sm:$0xff]  ;;  %4337 = vmatpush3.msra.mxu1 %v303_v25  ;;  %4345 = vmatprep.subr.mxu0 %v4900_v44  ;;  %s4903_s30 = smov 96   ;;  %s4910_s22 = smov 48  }
  0x64   :  { %4338 = vmatprep.subr.mxu1 %v302_v26  ;;  %v4087_v35 = vld [vmem:[%s5670_s2] ss:$0 sm:$0xff]  ;;  %4347 = vmatprep.mubr.msk.f32.mxu0 %vm4901_vm2, %v4900_v44  ;;  %s5659_s4 = smov 40   ;;  %s5657_s0 = smov 56  }
  0x65   :  { %4339 = vmatpush3.msra.mxu1 %v302_v26  ;;  %s4913_s21 = smov 24  }
  0x66   :  { %4340 = vmatprep.subr.mxu1 %v301_v27 }
  0x67   :  { %4341 = vmatpush3.msra.mxu1 %v301_v27 }
  0x68   :  { %4355 = vmatprep.subr.mxu1 %v4900_v44 }
 0x122   :  { %v4333_v4 = vpop.f32.mrf.mxu0 }
 0x123   :  { %v249_v7 = vadd.f32 %v4333_v4, %v4084_v5 }
 0x124   :  { %v243_v6 = vpop.f32.mrf.mxu0 }
 0x125   :  { %v244_v8 = vadd.f32 %v4084_v5, %v243_v6  ;;  %v254_v12 = vadd.f32 %v252_v9, %v249_v7 }
 0x127   :  { %v253_v10 = vadd.f32 %v252_v9, %v244_v8  ;;  %v261_v13 = vsel %vm257_vm1, %v254_v12, 0.0 }
 0x129   :  { %v258_v11 = vsel %vm257_vm1, %v253_v10, 0.0 }
 0x12a   :  { %259 = vadd.xlane.f32.xlu0 %v258_v11 }
 0x12e   :  { %262 = vadd.xlane.f32.xlu0 %v261_v13 }
 0x1b3   :  { %v260_v14 = vpop.xlane.xlu0 %259 }
 0x1b4   :  { %v265_v15 = vmul.f32 0.03125, %v260_v14 }
 0x1b6   :  { %v267_v16 = vsub.f32 %v253_v10, %v265_v15 }
 0x1b7   :  { %v263_v17 = vpop.xlane.xlu0 %262 }
 0x1b8   :  { %v266_v18 = vmul.f32 0.03125, %v263_v17  ;;  %v269_v19 = vmul.f32 %v267_v16, %v267_v16 }
 0x1ba   :  { %v268_v20 = vsub.f32 %v254_v12, %v266_v18  ;;  %v271_v21 = vsel %vm257_vm1, %v269_v19, 0.0 }
 0x1bb   :  { %272 = vadd.xlane.f32.xlu1 %v271_v21 }
 0x1bc   :  { %v270_v22 = vmul.f32 %v268_v20, %v268_v20 }
 0x1be   :  { %v274_v23 = vsel %vm257_vm1, %v270_v22, 0.0 }
 0x1bf   :  { %275 = vadd.xlane.f32.xlu1 %v274_v23 }
 0x244   :  { %v273_v28 = vpop.xlane.xlu1 %272 }
 0x245   :  { %v277_v29 = vmul.f32 0.03125, %v273_v28 }
 0x247   :  { %v279_v30 = vadd.f32 1e-05, %v277_v29 }
 0x248   :  { %v276_v31 = vpop.xlane.xlu1 %275 }
 0x249   :  { %4635 = vrsqrt.f32 %v279_v30  ;;  %v278_v32 = vmul.f32 0.03125, %v276_v31 }
 0x24b   :  { %v280_v33 = vadd.f32 1e-05, %v278_v32 }
 0x24d   :  { %4637 = vrsqrt.f32 %v280_v33 }
 0x256   :  { %v4636_v34 = vpop.eup %4635 }
 0x257   :  { %v283_v36 = vmul.f32 %v4636_v34, %v267_v16 }
 0x259   :  { %v291_v38 = vmul.f32 %v4087_v35, %v283_v36 }
 0x25a   :  { %v4638_v39 = vpop.eup %4637 }
 0x25b   :  { %v284_v40 = vmul.f32 %v4638_v39, %v268_v20  ;;  %v5084_v41 = vadd.f32 %v4088_v37, %v291_v38 }
 0x25d   :  { %v292_v42 = vmul.f32 %v4087_v35, %v284_v40  ;;  %4342 = vmatprep.mubr.msk.f32.mxu1 %vm257_vm1, %v5084_v41 }
 0x25f   :  { %v5088_v43 = vadd.f32 %v4088_v37, %v292_v42 }
 0x261   :  { %4343 = vmatmul.mubr.msk.f32.vlgmr.msra.gmra.mxu1 %vm257_vm1, %v5088_v43 }
 0x262   :  { %4357 = vmatprep.mubr.msk.f32.mxu1 %vm4901_vm2, %v4900_v44 }
 0x321   :  { %v4344_v45 = vpop.f32.mrf.mxu1 }
 0x322   :  { %v5115_v49 = vadd.f32 %v4344_v45, %v4089_v46 }
 0x323   :  { %v384_v47 = vpop.f32.mrf.mxu1 }
 0x324   :  { %v5101_v48 = vadd.f32 %v4089_v46, %v384_v47 }
 0x326   :  { %562 = vrot.lane.b32.xlu1 %v5101_v48, %s4902_s18  ;;  %394 = vrot.lane.b32.xlu0 %v5101_v48, %s4903_s30 }
 0x32a   :  { %560 = vrot.lane.b32.xlu1 %v5101_v48, %s4904_s26  ;;  %732 = vrot.lane.b32.xlu0 %v5101_v48, %s4905_s23 }
 0x32e   :  { %734 = vrot.lane.b32.xlu1 %v5101_v48, %s4906_s27  ;;  %904 = vrot.lane.b32.xlu0 %v5101_v48, %s4907_s28 }
 0x332   :  { %906 = vrot.lane.b32.xlu1 %v5101_v48, %s4908_s9  ;;  %1244 = vrot.lane.b32.xlu0 %v5115_v49, %s4902_s18 }
 0x336   :  { %1077 = vrot.lane.b32.xlu1 %v5115_v49, %s4903_s30  ;;  %1415 = vrot.lane.b32.xlu0 %v5115_v49, %s4906_s27 }
 0x33a   :  { %1242 = vrot.lane.b32.xlu1 %v5115_v49, %s4904_s26  ;;  %1586 = vrot.lane.b32.xlu0 %v5115_v49, %s4908_s9 }
 0x33e   :  { %1413 = vrot.lane.b32.xlu1 %v5115_v49, %s4905_s23 }
 0x342   :  { %1584 = vrot.lane.b32.xlu1 %v5115_v49, %s4907_s28 }
 0x398   :  { %v563_v50 = vpop.permute.xlu1 %562  ;;  %v395_v51 = vpop.permute.xlu0 %394 }
 0x399   :  { %4346 = vmatpush3.xpose.msk.msra.mxu0 %vm396_vm3, %v395_v51  ;;  %4356 = vmatpush3.xpose.msk.msra.mxu1 %vm396_vm3, %v563_v50 }
 0x39a   :  { %4365 = vmatprep.subr.mxu1 %v4900_v44  ;;  %4350 = vmatprep.subr.mxu0 %v4900_v44 }
 0x39c   :  { %v561_v52 = vpop.permute.xlu1 %560  ;;  %4348 = vmatmul.mubr.msk.f32.vlgmr.msra.gmra.mxu0 %vm396_vm3, %v5101_v48  ;;  %v733_v53 = vpop.permute.xlu0 %732 }
 0x39d   :  { %4358 = vmatmul.mubr.msk.f32.vlgmr.msra.gmra.mxu1 %vm396_vm3, %v561_v52  ;;  %4352 = vmatprep.mubr.msk.f32.mxu0 %vm4901_vm2, %v4900_v44 }
 0x39e   :  { %4367 = vmatprep.mubr.msk.f32.mxu1 %vm4901_vm2, %v4900_v44 }
 0x3a0   :  { %v735_v54 = vpop.permute.xlu1 %734  ;;  %v905_v55 = vpop.permute.xlu0 %904 }
 0x3a1   :  { %4366 = vmatpush3.xpose.msk.msra.mxu1 %vm396_vm3, %v735_v54 }
 0x3a2   :  { %4375 = vmatprep.subr.mxu1 %v4900_v44 }
 0x3a4   :  { %v907_v56 = vpop.permute.xlu1 %906  ;;  %4368 = vmatmul.mubr.msk.f32.vlgmr.msra.gmra.mxu1 %vm396_vm3, %v733_v53  ;;  %v1245_v57 = vpop.permute.xlu0 %1244 }
 0x3a5   :  { %4376 = vmatpush3.xpose.msk.msra.mxu1 %vm396_vm3, %v907_v56  ;;  %4377 = vmatprep.mubr.msk.f32.mxu1 %vm4901_vm2, %v4900_v44 }
 0x3a6   :  { %4385 = vmatprep.subr.mxu1 %v4900_v44 }
 0x3a8   :  { %v1078_v58 = vpop.permute.xlu1 %1077  ;;  %4378 = vmatmul.mubr.msk.f32.vlgmr.msra.gmra.mxu1 %vm396_vm3, %v905_v55  ;;  %v1416_v60 = vpop.permute.xlu0 %1415 }
 0x3a9   :  { %4386 = vmatpush3.xpose.msk.msra.mxu1 %vm396_vm3, %v1078_v58  ;;  %4387 = vmatprep.mubr.msk.f32.mxu1 %vm4901_vm2, %v4900_v44 }
 0x3aa   :  { %4395 = vmatprep.subr.mxu1 %v4900_v44 }
 0x3ac   :  { %v1243_v59 = vpop.permute.xlu1 %1242  ;;  %4388 = vmatmul.mubr.msk.f32.vlgmr.msra.gmra.mxu1 %vm396_vm3, %v5115_v49  ;;  %v1587_v62 = vpop.permute.xlu0 %1586 }
 0x3ad   :  { %4396 = vmatpush3.xpose.msk.msra.mxu1 %vm396_vm3, %v1245_v57  ;;  %4397 = vmatprep.mubr.msk.f32.mxu1 %vm4901_vm2, %v4900_v44 }
 0x3ae   :  { %4405 = vmatprep.subr.mxu1 %v4900_v44 }
 0x3b0   :  { %4398 = vmatmul.mubr.msk.f32.vlgmr.msra.gmra.mxu1 %vm396_vm3, %v1243_v59  ;;  %v1414_v61 = vpop.permute.xlu1 %1413 }
 0x3b1   :  { %4406 = vmatpush3.xpose.msk.msra.mxu1 %vm396_vm3, %v1416_v60  ;;  %4407 = vmatprep.mubr.msk.f32.mxu1 %vm4901_vm2, %v4900_v44 }
 0x3b2   :  { %4415 = vmatprep.subr.mxu1 %v4900_v44 }
 0x3b4   :  { %4408 = vmatmul.mubr.msk.f32.vlgmr.msra.gmra.mxu1 %vm396_vm3, %v1414_v61  ;;  %v1585_v63 = vpop.permute.xlu1 %1584 }
 0x3b5   :  { %4416 = vmatpush3.xpose.msk.msra.mxu1 %vm396_vm3, %v1587_v62  ;;  %4417 = vmatprep.mubr.msk.f32.mxu1 %vm4901_vm2, %v4900_v44 }
 0x3b8   :  { %4418 = vmatmul.mubr.msk.f32.vlgmr.msra.gmra.mxu1 %vm396_vm3, %v1585_v63 }
 0x45c   :  { %v467_v0 = vpop.f32.mrf.mxu0 }
 0x45d   :  { %v471_v1 = vmul.f32 0.35355338, %v467_v0  ;;  %v634_v2 = vpop.f32.mrf.mxu1 }
 0x45e   :  { %v638_v3 = vmul.f32 0.35355338, %v634_v2  ;;  %v4349_v4 = vpop.f32.mrf.mxu0 }
 0x45f   :  { %v4359_v5 = vpop.f32.mrf.mxu1  ;;  %v472_v6 = vsel %vm396_vm3, %v471_v1, -inf }
 0x460   :  { %473 = vmax.xlane.f32.xlu0 %v472_v6  ;;  %v639_v7 = vsel %vm396_vm3, %v638_v3, -inf }
 0x461   :  { %640 = vmax.xlane.f32.xlu1 %v639_v7 }
 0x464   :  { %v806_v8 = vpop.f32.mrf.mxu1 }
 0x465   :  { %v5174_v9 = vmul.f32 0.35355338, %v806_v8 }
 0x466   :  { %v4369_v10 = vpop.f32.mrf.mxu1 }
 0x467   :  { %v811_v11 = vsel %vm396_vm3, %v5174_v9, -inf }
 0x468   :  { %812 = vmax.xlane.f32.xlu0 %v811_v11  ;;  %v978_v12 = vpop.f32.mrf.mxu1 }
 0x469   :  { %v982_v13 = vmul.f32 0.35355338, %v978_v12 }
 0x46a   :  { %v4379_v14 = vpop.f32.mrf.mxu1 }
 0x46b   :  { %v983_v15 = vsel %vm396_vm3, %v982_v13, -inf }
 0x46c   :  { %984 = vmax.xlane.f32.xlu0 %v983_v15  ;;  %v1149_v16 = vpop.f32.mrf.mxu1 }
 0x46d   :  { %v1153_v17 = vmul.f32 0.35355338, %v1149_v16 }
 0x46e   :  { %v4389_v18 = vpop.f32.mrf.mxu1 }
 0x46f   :  { %v1154_v19 = vsel %vm396_vm3, %v1153_v17, -inf }
 0x470   :  { %1155 = vmax.xlane.f32.xlu0 %v1154_v19  ;;  %v1316_v20 = vpop.f32.mrf.mxu1 }
 0x471   :  { %v1320_v21 = vmul.f32 0.35355338, %v1316_v20 }
 0x472   :  { %v4399_v22 = vpop.f32.mrf.mxu1 }
 0x473   :  { %v1321_v23 = vsel %vm396_vm3, %v1320_v21, -inf }
 0x474   :  { %1322 = vmax.xlane.f32.xlu1 %v1321_v23  ;;  %v1487_v24 = vpop.f32.mrf.mxu1 }
 0x475   :  { %v1491_v25 = vmul.f32 0.35355338, %v1487_v24 }
 0x476   :  { %v4409_v26 = vpop.f32.mrf.mxu1 }
 0x477   :  { %v1492_v27 = vsel %vm396_vm3, %v1491_v25, -inf }
 0x478   :  { %1493 = vmax.xlane.f32.xlu0 %v1492_v27  ;;  %v1658_v28 = vpop.f32.mrf.mxu1 }
 0x479   :  { %v1662_v30 = vmul.f32 0.35355338, %v1658_v28 }
 0x47a   :  { %v4419_v29 = vpop.f32.mrf.mxu1 }
 0x47b   :  { %v1663_v31 = vsel %vm396_vm3, %v1662_v30, -inf }
 0x485   :  { %483 = vrot.lane.b32.xlu1 %v5101_v48, %s4909_s24 }
 0x4a9   :  { %1664 = vmax.xlane.f32.xlu1 %v1663_v31 }
 0x4ba   :  { %822 = vrot.lane.b32.xlu1 %v5101_v48, %s4910_s22 }
 0x4be   :  { %994 = vrot.lane.b32.xlu1 %v5101_v48, %s5659_s4 }
 0x4c2   :  { %1165 = vrot.lane.b32.xlu1 %v5115_v49, %s4909_s24 }
 0x4e9   :  { %v474_v32 = vpop.xlane.xlu0 %473 }
 0x4ea   :  { %v475_v33 = vsub.f32 %v471_v1, %v474_v32  ;;  %v641_v34 = vpop.xlane.xlu1 %640 }
 0x4eb   :  { %v642_v35 = vsub.f32 %v638_v3, %v641_v34 }
 0x4ec   :  { %v476_v36 = vmul.f32 1.442695, %v475_v33 }
 0x4ed   :  { %v643_v37 = vmul.f32 1.442695, %v642_v35 }
 0x4ee   :  { %4639 = vpow2.f32 %v476_v36 }
 0x4ef   :  { %4641 = vpow2.f32 %v643_v37 }
 0x4f1   :  { %v813_v38 = vpop.xlane.xlu0 %812 }
 0x4f2   :  { %v814_v55 = vsub.f32 %v5174_v9, %v813_v38 }
 0x4f4   :  { %v815_v57 = vmul.f32 1.442695, %v814_v55 }
 0x4f5   :  { %v985_v39 = vpop.xlane.xlu0 %984 }
 0x4f6   :  { %v986_v40 = vsub.f32 %v982_v13, %v985_v39 }
 0x4f8   :  { %v987_v42 = vmul.f32 1.442695, %v986_v40 }
 0x4f9   :  { %v1156_v56 = vpop.xlane.xlu0 %1155 }
 0x4fa   :  { %4643 = vpow2.f32 %v987_v42  ;;  %v1157_v58 = vsub.f32 %v1153_v17, %v1156_v56 }
 0x4fb   :  { %v4640_v45 = vpop.eup %4639  ;;  %4645 = vpow2.f32 %v815_v57  ;;  %v1760_v57 = vld [vmem:[%s5643_s8 + $0x18] sm:$0xff] }
 0x4fc   :  { %v5191_v46 = vpop.eup %4641  ;;  %v478_v47 = vsel %vm396_vm3, %v4640_v45, 0.0  ;;  %v1158_v60 = vmul.f32 1.442695, %v1157_v58  ;;  %v1759_v58 = vld [vmem:[%s5643_s8 + $0x10] sm:$0xff]  ;;  %4425 = vmatprep.subr.mxu1 %v1760_v57 }
 0x4fd   :  { %v1323_v50 = vpop.xlane.xlu1 %1322  ;;  %479 = vadd.xlane.f32.xlu0 %v478_v47  ;;  %v645_v51 = vsel %vm396_vm3, %v5191_v46, 0.0  ;;  %4426 = vmatpush3.msra.mxu1 %v1760_v57  ;;  %v1991_v57 = vld [vmem:[%s5649_s14 + $0x10] sm:$0xff] }
 0x4fe   :  { %646 = vadd.xlane.f32.xlu1 %v645_v51  ;;  %4647 = vpow2.f32 %v1158_v60  ;;  %v1324_v62 = vsub.f32 %v1320_v21, %v1323_v50  ;;  %v1758_v60 = vld [vmem:[%s5643_s8 + $0x8] sm:$0xff]  ;;  %4427 = vmatprep.subr.mxu1 %v1759_v58 }
 0x4ff   :  { %4428 = vmatpush3.msra.mxu1 %v1759_v58  ;;  %v1990_v58 = vld [vmem:[%s5649_s14 + $0x8] sm:$0xff] }
 0x500   :  { %v1325_v0 = vmul.f32 1.442695, %v1324_v62  ;;  %v1757_v62 = vld [vmem:[%s5643_s8] sm:$0xff]  ;;  %4429 = vmatprep.subr.mxu1 %v1758_v60 }
 0x501   :  { %v484_v52 = vpop.permute.xlu1 %483  ;;  %v1494_v59 = vpop.xlane.xlu0 %1493  ;;  %4430 = vmatpush3.msra.mxu1 %v1758_v60  ;;  %v4121_v60 = vld [vmem:[#allocation11] ss:$0 sm:$0xff] }
 0x502   :  { %4351 = vmatpush3.msra.mxu0 %v484_v52  ;;  %v1495_v61 = vsub.f32 %v1491_v25, %v1494_v59  ;;  %4431 = vmatprep.subr.mxu1 %v1757_v62 }
 0x503   :  { %4360 = vmatprep.subr.mxu0 %v4900_v44  ;;  %4432 = vmatpush3.msra.mxu1 %v1757_v62 }
 0x504   :  { %v1496_v63 = vmul.f32 1.442695, %v1495_v61 }
 0x506   :  { %4649 = vpow2.f32 %v1496_v63 }
 0x507   :  { %v5197_v53 = vpop.eup %4643  ;;  %4651 = vpow2.f32 %v1325_v0 }
 0x508   :  { %v989_v54 = vsel %vm396_vm3, %v5197_v53, 0.0  ;;  %v4646_v1 = vpop.eup %4645 }
 0x509   :  { %990 = vadd.xlane.f32.xlu1 %v989_v54 }
 0x50b   :  { %v5207_v2 = vpop.eup %4647 }
 0x50c   :  { %v1160_v6 = vsel %vm396_vm3, %v5207_v2, 0.0 }
 0x513   :  { %650 = vrot.lane.b32.xlu0 %v5101_v48, %s5657_s0  ;;  %v817_v48 = vsel %vm396_vm3, %v4646_v1, 0.0  ;;  %v5211_v7 = vpop.eup %4649 }
 0x514   :  { %v1498_v8 = vsel %vm396_vm3, %v5211_v7, 0.0  ;;  %v4652_v9 = vpop.eup %4651 }
 0x515   :  { %v1327_v10 = vsel %vm396_vm3, %v4652_v9, 0.0 }
 0x51a   :  { %1332 = vrot.lane.b32.xlu1 %v5115_v49, %s5657_s0 }
 0x532   :  { %v1665_v3 = vpop.xlane.xlu1 %1664  ;;  %818 = vadd.xlane.f32.xlu0 %v817_v48 }
 0x533   :  { %v1666_v4 = vsub.f32 %v1662_v30, %v1665_v3 }
 0x535   :  { %v1667_v5 = vmul.f32 1.442695, %v1666_v4 }
 0x536   :  { %1161 = vadd.xlane.f32.xlu0 %v1160_v6  ;;  %v823_v13 = vpop.permute.xlu1 %822 }
 0x537   :  { %4653 = vpow2.f32 %v1667_v5 }
 0x53a   :  { %1499 = vadd.xlane.f32.xlu0 %v1498_v8  ;;  %v995_v14 = vpop.permute.xlu1 %994 }
 0x53e   :  { %1328 = vadd.xlane.f32.xlu1 %v1327_v10  ;;  %v1166_v15 = vpop.permute.xlu1 %1165 }
 0x544   :  { %v5216_v11 = vpop.eup %4653 }
 0x545   :  { %v1669_v12 = vsel %vm396_vm3, %v5216_v11, 0.0 }
 0x546   :  { %1670 = vadd.xlane.f32.xlu0 %v1669_v12 }
 0x54f   :  { %1674 = vrot.lane.b32.xlu1 %v5115_v49, %s5659_s4 }
 0x55c   :  { %1503 = vrot.lane.b32.xlu0 %v5115_v49, %s4910_s22 }
 0x586   :  { %v480_v16 = vpop.xlane.xlu0 %479 }
 0x587   :  { %4655 = vrcp.f32 %v480_v16  ;;  %v647_v17 = vpop.xlane.xlu1 %646 }
 0x588   :  { %4657 = vrcp.f32 %v647_v17 }
 0x58a   :  { %v651_v21 = vpop.permute.xlu0 %650 }
 0x592   :  { %v991_v22 = vpop.xlane.xlu1 %990 }
 0x594   :  { %v4656_v18 = vpop.eup %4655 }
 0x595   :  { %v482_v19 = vmul.f32 %v4656_v18, %v4640_v45  ;;  %v4658_v20 = vpop.eup %4657 }
 0x596   :  { %v649_v49 = vmul.f32 %v4658_v20, %v5191_v46  ;;  %v1333_v25 = vpop.permute.xlu1 %1332 }
 0x597   :  { %4353 = vmatmul.mubr.msk.f32.vlgmr.msra.gmra.mxu0 %vm396_vm3, %v482_v19 }
 0x598   :  { %4361 = vmatpush3.msra.mxu0 %v651_v21  ;;  %4362 = vmatprep.mubr.msk.f32.mxu0 %vm4901_vm2, %v4900_v44 }
 0x599   :  { %4370 = vmatprep.subr.mxu0 %v4900_v44 }
 0x59b   :  { %4363 = vmatmul.mubr.msk.f32.vlgmr.msra.gmra.mxu0 %vm396_vm3, %v649_v49 }
 0x59c   :  { %4371 = vmatpush3.msra.mxu0 %v823_v13  ;;  %4372 = vmatprep.mubr.msk.f32.mxu0 %vm4901_vm2, %v4900_v44 }
 0x59d   :  { %4380 = vmatprep.subr.mxu0 %v4900_v44 }
 0x5bb   :  { %v819_v23 = vpop.xlane.xlu0 %818 }
 0x5bc   :  { %4659 = vrcp.f32 %v819_v23 }
 0x5bd   :  { %4661 = vrcp.f32 %v991_v22 }
 0x5bf   :  { %v1162_v24 = vpop.xlane.xlu0 %1161 }
 0x5c0   :  { %4663 = vrcp.f32 %v1162_v24 }
 0x5c3   :  { %v1500_v26 = vpop.xlane.xlu0 %1499 }
 0x5c7   :  { %v1329_v27 = vpop.xlane.xlu1 %1328 }
 0x5c8   :  { %4665 = vrcp.f32 %v1329_v27 }
 0x5c9   :  { %v4660_v28 = vpop.eup %4659  ;;  %4667 = vrcp.f32 %v1500_v26 }
 0x5ca   :  { %v821_v29 = vmul.f32 %v4660_v28, %v4646_v1  ;;  %v4662_v30 = vpop.eup %4661  ;;  %v1897_v28 = vld [vmem:[%s5647_s12 + $0x10] sm:$0xff] }
 0x5cb   :  { %v993_v31 = vmul.f32 %v4662_v30, %v5197_v53  ;;  %v1675_v40 = vpop.permute.xlu1 %1674  ;;  %v1895_v30 = vld [vmem:[%s5647_s12] sm:$0xff] }
 0x5cc   :  { %4373 = vmatmul.mubr.msk.f32.vlgmr.msra.gmra.mxu0 %vm396_vm3, %v821_v29  ;;  %v1896_v29 = vld [vmem:[%s5647_s12 + $0x8] sm:$0xff] }
 0x5cd   :  { %4381 = vmatpush3.msra.mxu0 %v995_v14  ;;  %4382 = vmatprep.mubr.msk.f32.mxu0 %vm4901_vm2, %v4900_v44  ;;  %v4664_v32 = vpop.eup %4663 }
 0x5ce   :  { %4390 = vmatprep.subr.mxu0 %v4900_v44  ;;  %v1164_v34 = vmul.f32 %v4664_v32, %v5207_v2  ;;  %v1995_v32 = vld [vmem:[%s5649_s14 + $0x30] sm:$0xff] }
 0x5cf   :  { %v1671_v33 = vpop.xlane.xlu0 %1670 }
 0x5d0   :  { %4669 = vrcp.f32 %v1671_v33  ;;  %4383 = vmatmul.mubr.msk.f32.vlgmr.msra.gmra.mxu0 %vm396_vm3, %v993_v31  ;;  %v1996_v31 = vld [vmem:[%s5649_s14 + $0x38] sm:$0xff]  ;;  %v1994_v33 = vld [vmem:[%s5649_s14 + $0x28] sm:$0xff] }
 0x5d1   :  { %4391 = vmatpush3.msra.mxu0 %v1166_v15  ;;  %4392 = vmatprep.mubr.msk.f32.mxu0 %vm4901_vm2, %v4900_v44 }
 0x5d2   :  { %4400 = vmatprep.subr.mxu0 %v4900_v44  ;;  %4447 = vmatprep.subr.mxu1 %v1996_v31 }
 0x5d3   :  { %v1504_v38 = vpop.permute.xlu0 %1503 }
 0x5d4   :  { %4393 = vmatmul.mubr.msk.f32.vlgmr.msra.gmra.mxu0 %vm396_vm3, %v1164_v34  ;;  %v1993_v34 = vld [vmem:[%s5649_s14 + $0x20] sm:$0xff] }
 0x5d5   :  { %v4666_v35 = vpop.eup %4665  ;;  %4401 = vmatpush3.msra.mxu0 %v1333_v25  ;;  %4402 = vmatprep.mubr.msk.f32.mxu0 %vm4901_vm2, %v4900_v44 }
 0x5d6   :  { %4410 = vmatprep.subr.mxu0 %v4900_v44  ;;  %v1331_v36 = vmul.f32 %v4666_v35, %v4652_v9  ;;  %v4668_v37 = vpop.eup %4667 }
 0x5d7   :  { %v1502_v39 = vmul.f32 %v4668_v37, %v5211_v7 }
 0x5d8   :  { %4403 = vmatmul.mubr.msk.f32.vlgmr.msra.gmra.mxu0 %vm396_vm3, %v1331_v36 }
 0x5d9   :  { %4411 = vmatpush3.msra.mxu0 %v1504_v38  ;;  %4412 = vmatprep.mubr.msk.f32.mxu0 %vm4901_vm2, %v4900_v44 }
 0x5da   :  { %4420 = vmatprep.subr.mxu0 %v4900_v44 }
 0x5dc   :  { %4413 = vmatmul.mubr.msk.f32.vlgmr.msra.gmra.mxu0 %vm396_vm3, %v1502_v39 }
 0x5dd   :  { %v4670_v42 = vpop.eup %4669  ;;  %4421 = vmatpush3.msra.mxu0 %v1675_v40  ;;  %4422 = vmatprep.mubr.msk.f32.mxu0 %vm4901_vm2, %v4900_v44 }
 0x5de   :  { %v1673_v45 = vmul.f32 %v4670_v42, %v5216_v11  ;;  %v4116_v11 = vld [vmem:[#allocation9] ss:$0 sm:$0xff] }
 0x5e0   :  { %4423 = vmatmul.mubr.msk.f32.vlgmr.msra.gmra.mxu0 %vm396_vm3, %v1673_v45  ;;  %v4119_v45 = vld [vmem:[%s5645_s10] ss:$0 sm:$0xff] }
 0x657   :  { %v555_v46 = vpop.f32.mrf.mxu0 }
 0x658   :  { %559 = vst.msk [vmem:[#allocation2] sm:$0xff] %vm396_vm3, %v555_v46 }
 0x659   :  { %v4354_v47 = vpop.f32.mrf.mxu0 }
 0x65a   :  { %v4120_v47 = vld [vmem:[%s5646_s11] ss:$0 sm:$0xff] }
 0x65b   :  { %v722_v50 = vpop.f32.mrf.mxu0 }
 0x65c   :  { %727 = vrot.lane.b32.xlu0 %v722_v50, %s4892_s3 }
 0x65d   :  { %v4364_v51 = vpop.f32.mrf.mxu0 }
 0x68c   :  { %v894_v52 = vpop.f32.mrf.mxu0 }
 0x68d   :  { %899 = vrot.lane.b32.xlu1 %v894_v52, %s4893_s29 }
 0x68e   :  { %v4374_v53 = vpop.f32.mrf.mxu0 }
 0x690   :  { %v1066_v54 = vpop.f32.mrf.mxu0 }
 0x691   :  { %1071 = vrot.lane.b32.xlu1 %v1066_v54, %s4913_s21 }
 0x692   :  { %v4384_v55 = vpop.f32.mrf.mxu0 }
 0x694   :  { %v1237_v56 = vpop.f32.mrf.mxu0 }
 0x695   :  { %1241 = vst.msk [vmem:[#allocation2 + $0x8] sm:$0xff] %vm396_vm3, %v1237_v56  ;;  %v1992_v56 = vld [vmem:[%s5649_s14 + $0x18] sm:$0xff] }
 0x696   :  { %v4394_v59 = vpop.f32.mrf.mxu0 }
 0x697   :  { %v1989_v59 = vld [vmem:[%s5649_s14] sm:$0xff] }
 0x698   :  { %v1404_v61 = vpop.f32.mrf.mxu0 }
 0x699   :  { %1409 = vrot.lane.b32.xlu0 %v1404_v61, %s4892_s3 }
 0x69a   :  { %v4404_v63 = vpop.f32.mrf.mxu0 }
 0x69c   :  { %v1575_v0 = vpop.f32.mrf.mxu0 }
 0x69d   :  { %1580 = vrot.lane.b32.xlu0 %v1575_v0, %s4893_s29 }
 0x69e   :  { %v4414_v1 = vpop.f32.mrf.mxu0 }
 0x6a0   :  { %v1746_v48 = vpop.f32.mrf.mxu0 }
 0x6a1   :  { %1751 = vrot.lane.b32.xlu1 %v1746_v48, %s4913_s21 }
 0x6a2   :  { %v4424_v2 = vpop.f32.mrf.mxu0 }
 0x6a3   :  { %v4124_v2 = vld [vmem:[#allocation12] ss:$0 sm:$0xff] }
 0x6ce   :  { %v728_v3 = vpop.permute.xlu0 %727 }
 0x6cf   :  { %731 = vst.msk [vmem:[#allocation2] sm:$0xff] %vm730_vm4, %v728_v3 }
 0x6ff   :  { %v900_v4 = vpop.permute.xlu1 %899 }
 0x700   :  { %903 = vst.msk [vmem:[#allocation2] sm:$0xff] %vm902_vm5, %v900_v4 }
 0x703   :  { %v1072_v5 = vpop.permute.xlu1 %1071 }
 0x704   :  { %1075 = vst.msk [vmem:[#allocation2] sm:$0xff] %vm1074_vm6, %v1072_v5 }
 0x70b   :  { %v1410_v6 = vpop.permute.xlu0 %1409  ;;  %v1755_v7 = vld [vmem:[#allocation2] sm:$0xff] }
 0x70c   :  { %1412 = vst.msk [vmem:[#allocation2 + $0x8] sm:$0xff] %vm730_vm4, %v1410_v6  ;;  %4433 = vmatprep.mubr.msk.f32.mxu1 %vm257_vm1, %v1755_v7 }
 0x70f   :  { %v1581_v8 = vpop.permute.xlu0 %1580 }
 0x710   :  { %1583 = vst.msk [vmem:[#allocation2 + $0x8] sm:$0xff] %vm902_vm5, %v1581_v8 }
 0x713   :  { %v1752_v9 = vpop.permute.xlu1 %1751 }
 0x714   :  { %1754 = vst.msk [vmem:[#allocation2 + $0x8] sm:$0xff] %vm1074_vm6, %v1752_v9 }
 0x71b   :  { %v1756_v10 = vld [vmem:[#allocation2 + $0x8] sm:$0xff] }
 0x71c   :  { %4434 = vmatmul.mubr.msk.f32.vlgmr.msra.gmra.mxu1 %vm257_vm1, %v1756_v10 }
 0x71d   :  { %4448 = vmatpush3.msra.mxu1 %v1996_v31 }
 0x71e   :  { %4449 = vmatprep.subr.mxu1 %v1995_v32 }
 0x71f   :  { %4450 = vmatpush3.msra.mxu1 %v1995_v32 }
 0x720   :  { %4451 = vmatprep.subr.mxu1 %v1994_v33 }
 0x721   :  { %4452 = vmatpush3.msra.mxu1 %v1994_v33 }
 0x722   :  { %4453 = vmatprep.subr.mxu1 %v1993_v34 }
 0x723   :  { %4454 = vmatpush3.msra.mxu1 %v1993_v34  ;;  %v4128_v34 = vld [vmem:[%s5652_s17] ss:$0 sm:$0xff] }
 0x724   :  { %4455 = vmatprep.subr.mxu1 %v1992_v56 }
 0x725   :  { %4456 = vmatpush3.msra.mxu1 %v1992_v56 }
 0x726   :  { %4457 = vmatprep.subr.mxu1 %v1991_v57 }
 0x727   :  { %4458 = vmatpush3.msra.mxu1 %v1991_v57 }
 0x728   :  { %4459 = vmatprep.subr.mxu1 %v1990_v58 }
 0x729   :  { %4460 = vmatpush3.msra.mxu1 %v1990_v58 }
 0x72a   :  { %4461 = vmatprep.subr.mxu1 %v1989_v59 }
 0x72b   :  { %4462 = vmatpush3.msra.mxu1 %v1989_v59 }
 0x72c   :  { %4487 = vmatprep.subr.mxu1 %v4900_v44 }
 0x7dc   :  { %v4435_v12 = vpop.f32.mrf.mxu1 }
 0x7dd   :  { %v1846_v13 = vadd.f32 %v4435_v12, %v4116_v11 }
 0x7de   :  { %v1840_v14 = vpop.f32.mrf.mxu1 }
 0x7df   :  { %v1841_v15 = vadd.f32 %v4116_v11, %v1840_v14  ;;  %v1850_v16 = vadd.f32 %v1846_v13, %v5088_v43 }
 0x7e1   :  { %v1856_v17 = vsel %vm257_vm1, %v1850_v16, 0.0  ;;  %v1849_v18 = vadd.f32 %v1841_v15, %v5084_v41  ;;  %v1898_v41 = vld [vmem:[%s5647_s12 + $0x18] sm:$0xff] }
 0x7e2   :  { %1857 = vadd.xlane.f32.xlu1 %v1856_v17  ;;  %4436 = vmatprep.subr.mxu0 %v1898_v41 }
 0x7e3   :  { %v1853_v19 = vsel %vm257_vm1, %v1849_v18, 0.0  ;;  %4437 = vmatpush3.msra.mxu0 %v1898_v41 }
 0x7e4   :  { %1854 = vadd.xlane.f32.xlu0 %v1853_v19  ;;  %4438 = vmatprep.subr.mxu0 %v1897_v28 }
 0x7e5   :  { %4439 = vmatpush3.msra.mxu0 %v1897_v28 }
 0x7e6   :  { %4440 = vmatprep.subr.mxu0 %v1896_v29 }
 0x7e7   :  { %4441 = vmatpush3.msra.mxu0 %v1896_v29  ;;  %v4127_v29 = vld [vmem:[%s5651_s16] ss:$0 sm:$0xff] }
 0x7e8   :  { %4442 = vmatprep.subr.mxu0 %v1895_v30 }
 0x7e9   :  { %4443 = vmatpush3.msra.mxu0 %v1895_v30 }
 0x86b   :  { %v1858_v20 = vpop.xlane.xlu1 %1857 }
 0x86c   :  { %v1860_v21 = vmul.f32 0.03125, %v1858_v20 }
 0x86d   :  { %v1855_v49 = vpop.xlane.xlu0 %1854 }
 0x86e   :  { %v1859_v22 = vmul.f32 0.03125, %v1855_v49  ;;  %v1862_v23 = vsub.f32 %v1850_v16, %v1860_v21  ;;  %v4132_v21 = vld [vmem:[%s5641_s6 + $0x38] sm:$0xff]  ;;  %v4131_v49 = vld [vmem:[%s5641_s6 + $0x30] sm:$0xff] }
 0x86f   :  { %4466 = vmatprep.subr.mxu0 %v4132_v21 }
 0x870   :  { %v1861_v24 = vsub.f32 %v1849_v18, %v1859_v22  ;;  %v1864_v27 = vmul.f32 %v1862_v23, %v1862_v23  ;;  %v4130_v22 = vld [vmem:[%s5641_s6 + $0x28] sm:$0xff] }
 0x872   :  { %v1863_v25 = vmul.f32 %v1861_v24, %v1861_v24  ;;  %v1868_v43 = vsel %vm257_vm1, %v1864_v27, 0.0 }
 0x874   :  { %v1865_v26 = vsel %vm257_vm1, %v1863_v25, 0.0 }
 0x875   :  { %1866 = vadd.xlane.f32.xlu0 %v1865_v26 }
 0x879   :  { %1869 = vadd.xlane.f32.xlu0 %v1868_v43 }
 0x8fe   :  { %v1867_v35 = vpop.xlane.xlu0 %1866 }
 0x8ff   :  { %v1871_v36 = vmul.f32 0.03125, %v1867_v35 }
 0x901   :  { %v1873_v37 = vadd.f32 1e-05, %v1871_v36 }
 0x902   :  { %v1870_v38 = vpop.xlane.xlu0 %1869 }
 0x903   :  { %4671 = vrsqrt.f32 %v1873_v37  ;;  %v1872_v39 = vmul.f32 0.03125, %v1870_v38 }
 0x905   :  { %v1874_v40 = vadd.f32 1e-05, %v1872_v39  ;;  %v4134_v39 = vld [vmem:[%s5642_s7 + $0x1] ss:$0 sm:$0xff]  ;;  %s5671_s7 = smov 40  }
 0x907   :  { %4673 = vrsqrt.f32 %v1874_v40 }
 0x910   :  { %v4672_v42 = vpop.eup %4671 }
 0x911   :  { %v1877_v46 = vmul.f32 %v4672_v42, %v1861_v24 }
 0x913   :  { %v1885_v50 = vmul.f32 %v4119_v45, %v1877_v46 }
 0x914   :  { %v4674_v51 = vpop.eup %4673 }
 0x915   :  { %v1878_v52 = vmul.f32 %v4674_v51, %v1862_v23  ;;  %v1893_v53 = vadd.f32 %v4120_v47, %v1885_v50  ;;  %v4129_v23 = vld [vmem:[%s5641_s6 + $0x20] sm:$0xff] }
 0x917   :  { %v1886_v54 = vmul.f32 %v4119_v45, %v1878_v52  ;;  %4444 = vmatprep.mubr.msk.f32.mxu0 %vm257_vm1, %v1893_v53 }
 0x919   :  { %v1894_v55 = vadd.f32 %v4120_v47, %v1886_v54 }
 0x91b   :  { %4445 = vmatmul.mubr.msk.f32.vlgmr.msra.gmra.mxu0 %vm257_vm1, %v1894_v55 }
 0x91c   :  { %4467 = vmatpush3.msra.mxu0 %v4132_v21 }
 0x91d   :  { %4468 = vmatprep.subr.mxu0 %v4131_v49 }
 0x91e   :  { %4469 = vmatpush3.msra.mxu0 %v4131_v49 }
 0x91f   :  { %4470 = vmatprep.subr.mxu0 %v4130_v22 }
 0x920   :  { %4471 = vmatpush3.msra.mxu0 %v4130_v22 }
 0x921   :  { %4472 = vmatprep.subr.mxu0 %v4129_v23 }
 0x922   :  { %4473 = vmatpush3.msra.mxu0 %v4129_v23 }
 0x923   :  { %4477 = vmatprep.subr.mxu0 %v4900_v44 }
 0x9db   :  { %v4446_v61 = vpop.f32.mrf.mxu0 }
 0x9dc   :  { %v1984_v62 = vadd.f32 %v4446_v61, %v4121_v60 }
 0x9dd   :  { %v1978_v63 = vpop.f32.mrf.mxu0 }
 0x9de   :  { %v1979_v0 = vadd.f32 %v4121_v60, %v1978_v63  ;;  %v1988_v48 = vmax.f32 %v1984_v62, 0.0 }
 0x9e0   :  { %v1987_v1 = vmax.f32 %v1979_v0, 0.0 }
 0x9e2   :  { %4463 = vmatprep.mubr.msk.f32.mxu1 %vm2004_vm7, %v1987_v1 }
 0x9e3   :  { %4464 = vmatmul.mubr.msk.f32.vlgmr.msra.gmra.mxu1 %vm2004_vm7, %v1988_v48 }
 0x9e4   :  { %4489 = vmatprep.mubr.msk.f32.mxu1 %vm4901_vm2, %v4900_v44 }
 0xaa3   :  { %v4465_v3 = vpop.f32.mrf.mxu1 }
 0xaa4   :  { %v2083_v4 = vadd.f32 %v4465_v3, %v4124_v2 }
 0xaa5   :  { %v2077_v5 = vpop.f32.mrf.mxu1 }
 0xaa6   :  { %v2078_v6 = vadd.f32 %v4124_v2, %v2077_v5  ;;  %v2087_v7 = vadd.f32 %v2083_v4, %v1894_v55 }
 0xaa8   :  { %v2093_v8 = vsel %vm257_vm1, %v2087_v7, 0.0  ;;  %v2086_v9 = vadd.f32 %v2078_v6, %v1893_v53 }
 0xaa9   :  { %2094 = vadd.xlane.f32.xlu1 %v2093_v8 }
 0xaaa   :  { %v2090_v10 = vsel %vm257_vm1, %v2086_v9, 0.0 }
 0xaab   :  { %2091 = vadd.xlane.f32.xlu0 %v2090_v10 }
 0xb32   :  { %v2095_v11 = vpop.xlane.xlu1 %2094 }
 0xb33   :  { %v2097_v12 = vmul.f32 0.03125, %v2095_v11 }
 0xb34   :  { %v2092_v13 = vpop.xlane.xlu0 %2091 }
 0xb35   :  { %v2099_v14 = vsub.f32 %v2087_v7, %v2097_v12  ;;  %v2096_v15 = vmul.f32 0.03125, %v2092_v13 }
 0xb37   :  { %v2098_v16 = vsub.f32 %v2086_v9, %v2096_v15  ;;  %v2101_v17 = vmul.f32 %v2099_v14, %v2099_v14 }
 0xb39   :  { %v2105_v18 = vsel %vm257_vm1, %v2101_v17, 0.0  ;;  %v2100_v19 = vmul.f32 %v2098_v16, %v2098_v16 }
 0xb3a   :  { %2106 = vadd.xlane.f32.xlu1 %v2105_v18 }
 0xb3b   :  { %v2102_v20 = vsel %vm257_vm1, %v2100_v19, 0.0 }
 0xb3c   :  { %2103 = vadd.xlane.f32.xlu0 %v2102_v20 }
 0xbc3   :  { %v2107_v24 = vpop.xlane.xlu1 %2106 }
 0xbc4   :  { %v2109_v25 = vmul.f32 0.03125, %v2107_v24 }
 0xbc5   :  { %v2104_v26 = vpop.xlane.xlu0 %2103 }
 0xbc6   :  { %v2111_v27 = vadd.f32 1e-05, %v2109_v25  ;;  %v2108_v43 = vmul.f32 0.03125, %v2104_v26 }
 0xbc8   :  { %4675 = vrsqrt.f32 %v2111_v27  ;;  %v2110_v41 = vadd.f32 1e-05, %v2108_v43 }
 0xbca   :  { %4677 = vrsqrt.f32 %v2110_v41 }
 0xbd5   :  { %v4676_v28 = vpop.eup %4675 }
 0xbd6   :  { %v2115_v30 = vmul.f32 %v4676_v28, %v2099_v14 }
 0xbd7   :  { %v4678_v31 = vpop.eup %4677 }
 0xbd8   :  { %v2114_v32 = vmul.f32 %v4678_v31, %v2098_v16  ;;  %v2123_v33 = vmul.f32 %v4127_v29, %v2115_v30 }
 0xbda   :  { %v2122_v35 = vmul.f32 %v4127_v29, %v2114_v32  ;;  %v5365_v37 = vadd.f32 %v4128_v34, %v2123_v33 }
 0xbdc   :  { %v5363_v36 = vadd.f32 %v4128_v34, %v2122_v35 }
 0xbde   :  { %4474 = vmatprep.mubr.msk.f32.mxu0 %vm257_vm1, %v5363_v36 }
 0xbdf   :  { %4475 = vmatmul.mubr.msk.f32.vlgmr.msra.gmra.mxu0 %vm257_vm1, %v5365_v37 }
 0xbe0   :  { %4479 = vmatprep.mubr.msk.f32.mxu0 %vm4901_vm2, %v4900_v44 }
 0xc9f   :  { %v4476_v38 = vpop.f32.mrf.mxu0 }
 0xca0   :  { %v5390_v45 = vadd.f32 %v4476_v38, %v4134_v39 }
 0xca1   :  { %v2217_v40 = vpop.f32.mrf.mxu0 }
 0xca2   :  { %v5376_v42 = vadd.f32 %v4134_v39, %v2217_v40 }
 0xca4   :  { %2394 = vrot.lane.b32.xlu1 %v5376_v42, %s4902_s18  ;;  %2227 = vrot.lane.b32.xlu0 %v5376_v42, %s4903_s30 }
 0xca8   :  { %2392 = vrot.lane.b32.xlu1 %v5376_v42, %s4904_s26  ;;  %2563 = vrot.lane.b32.xlu0 %v5376_v42, %s4905_s23 }
 0xcac   :  { %2565 = vrot.lane.b32.xlu1 %v5376_v42, %s4906_s27  ;;  %2734 = vrot.lane.b32.xlu0 %v5376_v42, %s4907_s28 }
 0xcb0   :  { %2736 = vrot.lane.b32.xlu1 %v5376_v42, %s4908_s9  ;;  %3073 = vrot.lane.b32.xlu0 %v5390_v45, %s4902_s18  ;;  %s5672_s18 = smov 56  }
 0xcb4   :  { %2906 = vrot.lane.b32.xlu1 %v5390_v45, %s4903_s30  ;;  %3244 = vrot.lane.b32.xlu0 %v5390_v45, %s4906_s27 }
 0xcb8   :  { %3071 = vrot.lane.b32.xlu1 %v5390_v45, %s4904_s26  ;;  %3415 = vrot.lane.b32.xlu0 %v5390_v45, %s4908_s9 }
 0xcbc   :  { %3242 = vrot.lane.b32.xlu1 %v5390_v45, %s4905_s23 }
 0xcc0   :  { %3413 = vrot.lane.b32.xlu1 %v5390_v45, %s4907_s28 }
 0xd16   :  { %v2395_v46 = vpop.permute.xlu1 %2394  ;;  %v2228_v47 = vpop.permute.xlu0 %2227 }
 0xd17   :  { %4478 = vmatpush3.xpose.msk.msra.mxu0 %vm396_vm3, %v2228_v47  ;;  %4488 = vmatpush3.xpose.msk.msra.mxu1 %vm396_vm3, %v2395_v46 }
 0xd18   :  { %4497 = vmatprep.subr.mxu1 %v4900_v44  ;;  %4482 = vmatprep.subr.mxu0 %v4900_v44 }
 0xd1a   :  { %v2393_v50 = vpop.permute.xlu1 %2392  ;;  %4480 = vmatmul.mubr.msk.f32.vlgmr.msra.gmra.mxu0 %vm396_vm3, %v5376_v42  ;;  %v2564_v51 = vpop.permute.xlu0 %2563 }
 0xd1b   :  { %4490 = vmatmul.mubr.msk.f32.vlgmr.msra.gmra.mxu1 %vm396_vm3, %v2393_v50  ;;  %4484 = vmatprep.mubr.msk.f32.mxu0 %vm4901_vm2, %v4900_v44 }
 0xd1c   :  { %4499 = vmatprep.mubr.msk.f32.mxu1 %vm4901_vm2, %v4900_v44 }
 0xd1e   :  { %v2566_v52 = vpop.permute.xlu1 %2565  ;;  %v2735_v53 = vpop.permute.xlu0 %2734 }
 0xd1f   :  { %4498 = vmatpush3.xpose.msk.msra.mxu1 %vm396_vm3, %v2566_v52 }
 0xd20   :  { %4507 = vmatprep.subr.mxu1 %v4900_v44 }
 0xd22   :  { %v2737_v54 = vpop.permute.xlu1 %2736  ;;  %4500 = vmatmul.mubr.msk.f32.vlgmr.msra.gmra.mxu1 %vm396_vm3, %v2564_v51  ;;  %v3074_v55 = vpop.permute.xlu0 %3073 }
 0xd23   :  { %4508 = vmatpush3.xpose.msk.msra.mxu1 %vm396_vm3, %v2737_v54  ;;  %4509 = vmatprep.mubr.msk.f32.mxu1 %vm4901_vm2, %v4900_v44 }
 0xd24   :  { %4517 = vmatprep.subr.mxu1 %v4900_v44 }
 0xd26   :  { %v2907_v56 = vpop.permute.xlu1 %2906  ;;  %4510 = vmatmul.mubr.msk.f32.vlgmr.msra.gmra.mxu1 %vm396_vm3, %v2735_v53  ;;  %v3245_v58 = vpop.permute.xlu0 %3244 }
 0xd27   :  { %4518 = vmatpush3.xpose.msk.msra.mxu1 %vm396_vm3, %v2907_v56  ;;  %4519 = vmatprep.mubr.msk.f32.mxu1 %vm4901_vm2, %v4900_v44 }
 0xd28   :  { %4527 = vmatprep.subr.mxu1 %v4900_v44 }
 0xd2a   :  { %v3072_v57 = vpop.permute.xlu1 %3071  ;;  %4520 = vmatmul.mubr.msk.f32.vlgmr.msra.gmra.mxu1 %vm396_vm3, %v5390_v45  ;;  %v3416_v60 = vpop.permute.xlu0 %3415 }
 0xd2b   :  { %4528 = vmatpush3.xpose.msk.msra.mxu1 %vm396_vm3, %v3074_v55  ;;  %4529 = vmatprep.mubr.msk.f32.mxu1 %vm4901_vm2, %v4900_v44 }
 0xd2c   :  { %4537 = vmatprep.subr.mxu1 %v4900_v44 }
 0xd2e   :  { %4530 = vmatmul.mubr.msk.f32.vlgmr.msra.gmra.mxu1 %vm396_vm3, %v3072_v57  ;;  %v3243_v59 = vpop.permute.xlu1 %3242 }
 0xd2f   :  { %4538 = vmatpush3.xpose.msk.msra.mxu1 %vm396_vm3, %v3245_v58  ;;  %4539 = vmatprep.mubr.msk.f32.mxu1 %vm4901_vm2, %v4900_v44 }
 0xd30   :  { %4547 = vmatprep.subr.mxu1 %v4900_v44 }
 0xd32   :  { %4540 = vmatmul.mubr.msk.f32.vlgmr.msra.gmra.mxu1 %vm396_vm3, %v3243_v59  ;;  %v3414_v61 = vpop.permute.xlu1 %3413 }
 0xd33   :  { %4548 = vmatpush3.xpose.msk.msra.mxu1 %vm396_vm3, %v3416_v60  ;;  %4549 = vmatprep.mubr.msk.f32.mxu1 %vm4901_vm2, %v4900_v44 }
 0xd36   :  { %4550 = vmatmul.mubr.msk.f32.vlgmr.msra.gmra.mxu1 %vm396_vm3, %v3414_v61 }
 0xdda   :  { %v2299_v62 = vpop.f32.mrf.mxu0 }
 0xddb   :  { %v2303_v63 = vmul.f32 0.35355338, %v2299_v62  ;;  %v2466_v0 = vpop.f32.mrf.mxu1 }
 0xddc   :  { %v2470_v1 = vmul.f32 0.35355338, %v2466_v0  ;;  %v4481_v48 = vpop.f32.mrf.mxu0 }
 0xddd   :  { %v4491_v2 = vpop.f32.mrf.mxu1  ;;  %v2304_v3 = vsel %vm396_vm3, %v2303_v63, -inf }
 0xdde   :  { %2305 = vmax.xlane.f32.xlu0 %v2304_v3  ;;  %v2471_v4 = vsel %vm396_vm3, %v2470_v1, -inf }
 0xddf   :  { %2472 = vmax.xlane.f32.xlu1 %v2471_v4 }
 0xde2   :  { %v2637_v5 = vpop.f32.mrf.mxu1 }
 0xde3   :  { %v5449_v6 = vmul.f32 0.35355338, %v2637_v5 }
 0xde4   :  { %v4501_v7 = vpop.f32.mrf.mxu1 }
 0xde5   :  { %v2642_v8 = vsel %vm396_vm3, %v5449_v6, -inf }
 0xde6   :  { %2643 = vmax.xlane.f32.xlu0 %v2642_v8  ;;  %v2808_v9 = vpop.f32.mrf.mxu1 }
 0xde7   :  { %v2812_v10 = vmul.f32 0.35355338, %v2808_v9 }
 0xde8   :  { %v4511_v11 = vpop.f32.mrf.mxu1 }
 0xde9   :  { %v2813_v12 = vsel %vm396_vm3, %v2812_v10, -inf }
 0xdea   :  { %2814 = vmax.xlane.f32.xlu0 %v2813_v12  ;;  %v2978_v13 = vpop.f32.mrf.mxu1 }
 0xdeb   :  { %v2982_v14 = vmul.f32 0.35355338, %v2978_v13 }
 0xdec   :  { %v4521_v15 = vpop.f32.mrf.mxu1 }
 0xded   :  { %v2983_v16 = vsel %vm396_vm3, %v2982_v14, -inf }
 0xdee   :  { %2984 = vmax.xlane.f32.xlu0 %v2983_v16  ;;  %v3145_v17 = vpop.f32.mrf.mxu1 }
 0xdef   :  { %v3149_v18 = vmul.f32 0.35355338, %v3145_v17 }
 0xdf0   :  { %v4531_v19 = vpop.f32.mrf.mxu1 }
 0xdf1   :  { %v3150_v20 = vsel %vm396_vm3, %v3149_v18, -inf }
 0xdf2   :  { %3151 = vmax.xlane.f32.xlu1 %v3150_v20  ;;  %v3316_v21 = vpop.f32.mrf.mxu1 }
 0xdf3   :  { %v3320_v49 = vmul.f32 0.35355338, %v3316_v21 }
 0xdf4   :  { %v4541_v22 = vpop.f32.mrf.mxu1 }
 0xdf5   :  { %v3321_v23 = vsel %vm396_vm3, %v3320_v49, -inf }
 0xdf6   :  { %3322 = vmax.xlane.f32.xlu0 %v3321_v23  ;;  %v3487_v24 = vpop.f32.mrf.mxu1 }
 0xdf7   :  { %v3491_v26 = vmul.f32 0.35355338, %v3487_v24 }
 0xdf8   :  { %v4551_v25 = vpop.f32.mrf.mxu1 }
 0xdf9   :  { %v3492_v27 = vsel %vm396_vm3, %v3491_v26, -inf }
 0xe03   :  { %2315 = vrot.lane.b32.xlu1 %v5376_v42, %s4909_s24 }
 0xe27   :  { %3493 = vmax.xlane.f32.xlu1 %v3492_v27 }
 0xe38   :  { %2653 = vrot.lane.b32.xlu1 %v5376_v42, %s4910_s22 }
 0xe3c   :  { %2824 = vrot.lane.b32.xlu1 %v5376_v42, %s5671_s7 }
 0xe40   :  { %2994 = vrot.lane.b32.xlu1 %v5390_v45, %s4909_s24 }
 0xe67   :  { %v2306_v43 = vpop.xlane.xlu0 %2305 }
 0xe68   :  { %v2307_v41 = vsub.f32 %v2303_v63, %v2306_v43  ;;  %v2473_v28 = vpop.xlane.xlu1 %2472 }
 0xe69   :  { %v2474_v29 = vsub.f32 %v2470_v1, %v2473_v28 }
 0xe6a   :  { %v2308_v30 = vmul.f32 1.442695, %v2307_v41 }
 0xe6b   :  { %v2475_v31 = vmul.f32 1.442695, %v2474_v29 }
 0xe6c   :  { %4679 = vpow2.f32 %v2308_v30 }
 0xe6d   :  { %4681 = vpow2.f32 %v2475_v31 }
 0xe6f   :  { %v2644_v32 = vpop.xlane.xlu0 %2643 }
 0xe70   :  { %v2645_v53 = vsub.f32 %v5449_v6, %v2644_v32 }
 0xe72   :  { %v2646_v55 = vmul.f32 1.442695, %v2645_v53 }
 0xe73   :  { %v2815_v33 = vpop.xlane.xlu0 %2814 }
 0xe74   :  { %v2816_v34 = vsub.f32 %v2812_v10, %v2815_v33 }
 0xe76   :  { %v2817_v35 = vmul.f32 1.442695, %v2816_v34 }
 0xe77   :  { %v2985_v54 = vpop.xlane.xlu0 %2984 }
 0xe78   :  { %4683 = vpow2.f32 %v2817_v35  ;;  %v2986_v56 = vsub.f32 %v2982_v14, %v2985_v54  ;;  %v4164_v54 = vld [vmem:[%s5643_s8 + $0x38] sm:$0xff] }
 0xe79   :  { %v4680_v38 = vpop.eup %4679  ;;  %4685 = vpow2.f32 %v2646_v55  ;;  %v4163_v55 = vld [vmem:[%s5643_s8 + $0x30] sm:$0xff]  ;;  %4557 = vmatprep.subr.mxu1 %v4164_v54 }
 0xe7a   :  { %v5466_v39 = vpop.eup %4681  ;;  %v2310_v40 = vsel %vm396_vm3, %v4680_v38, 0.0  ;;  %v2987_v58 = vmul.f32 1.442695, %v2986_v56  ;;  %4558 = vmatpush3.msra.mxu1 %v4164_v54  ;;  %v4180_v54 = vld [vmem:[%s5649_s14 + $0x48] sm:$0xff] }
 0xe7b   :  { %v3152_v46 = vpop.xlane.xlu1 %3151  ;;  %2311 = vadd.xlane.f32.xlu0 %v2310_v40  ;;  %v2477_v47 = vsel %vm396_vm3, %v5466_v39, 0.0  ;;  %4559 = vmatprep.subr.mxu1 %v4163_v55 }
 0xe7c   :  { %2478 = vadd.xlane.f32.xlu1 %v2477_v47  ;;  %4687 = vpow2.f32 %v2987_v58  ;;  %v3153_v60 = vsub.f32 %v3149_v18, %v3152_v46  ;;  %4560 = vmatpush3.msra.mxu1 %v4163_v55  ;;  %v4179_v55 = vld [vmem:[%s5649_s14 + $0x40] sm:$0xff] }
 0xe7e   :  { %v3154_v62 = vmul.f32 1.442695, %v3153_v60 }
 0xe7f   :  { %v2316_v50 = vpop.permute.xlu1 %2315  ;;  %v3323_v57 = vpop.xlane.xlu0 %3322 }
 0xe80   :  { %4483 = vmatpush3.msra.mxu0 %v2316_v50  ;;  %v3324_v59 = vsub.f32 %v3320_v49, %v3323_v57  ;;  %v4162_v57 = vld [vmem:[%s5643_s8 + $0x28] sm:$0xff] }
 0xe81   :  { %4492 = vmatprep.subr.mxu0 %v4900_v44  ;;  %4561 = vmatprep.subr.mxu1 %v4162_v57 }
 0xe82   :  { %v3325_v61 = vmul.f32 1.442695, %v3324_v59  ;;  %v4161_v59 = vld [vmem:[%s5643_s8 + $0x20] sm:$0xff]  ;;  %4562 = vmatpush3.msra.mxu1 %v4162_v57 }
 0xe83   :  { %4563 = vmatprep.subr.mxu1 %v4161_v59 }
 0xe84   :  { %4689 = vpow2.f32 %v3325_v61  ;;  %4564 = vmatpush3.msra.mxu1 %v4161_v59 }
 0xe85   :  { %v5472_v51 = vpop.eup %4683  ;;  %4691 = vpow2.f32 %v3154_v62 }
 0xe86   :  { %v2819_v52 = vsel %vm396_vm3, %v5472_v51, 0.0  ;;  %v4686_v63 = vpop.eup %4685 }
 0xe87   :  { %2820 = vadd.xlane.f32.xlu1 %v2819_v52 }
 0xe89   :  { %v5482_v0 = vpop.eup %4687 }
 0xe8a   :  { %v2989_v3 = vsel %vm396_vm3, %v5482_v0, 0.0 }
 0xe91   :  { %2482 = vrot.lane.b32.xlu0 %v5376_v42, %s5672_s18  ;;  %v2648_v42 = vsel %vm396_vm3, %v4686_v63, 0.0  ;;  %v5486_v4 = vpop.eup %4689 }
 0xe92   :  { %v3327_v5 = vsel %vm396_vm3, %v5486_v4, 0.0  ;;  %v4692_v6 = vpop.eup %4691 }
 0xe93   :  { %v3156_v7 = vsel %vm396_vm3, %v4692_v6, 0.0 }
 0xe98   :  { %3161 = vrot.lane.b32.xlu1 %v5390_v45, %s5672_s18 }
 0xeb0   :  { %v3494_v1 = vpop.xlane.xlu1 %3493  ;;  %2649 = vadd.xlane.f32.xlu0 %v2648_v42 }
 0xeb1   :  { %v3495_v48 = vsub.f32 %v3491_v26, %v3494_v1 }
 0xeb3   :  { %v3496_v2 = vmul.f32 1.442695, %v3495_v48 }
 0xeb4   :  { %2990 = vadd.xlane.f32.xlu0 %v2989_v3  ;;  %v2654_v10 = vpop.permute.xlu1 %2653 }
 0xeb5   :  { %4693 = vpow2.f32 %v3496_v2 }
 0xeb8   :  { %3328 = vadd.xlane.f32.xlu0 %v3327_v5  ;;  %v2825_v11 = vpop.permute.xlu1 %2824 }
 0xebc   :  { %3157 = vadd.xlane.f32.xlu1 %v3156_v7  ;;  %v2995_v12 = vpop.permute.xlu1 %2994  ;;  %v4165_v7 = vld [vmem:[#allocation9 + $0x1] ss:$0 sm:$0xff] }
 0xec2   :  { %v5491_v8 = vpop.eup %4693 }
 0xec3   :  { %v3498_v9 = vsel %vm396_vm3, %v5491_v8, 0.0 }
 0xec4   :  { %3499 = vadd.xlane.f32.xlu0 %v3498_v9 }
 0xecd   :  { %3503 = vrot.lane.b32.xlu1 %v5390_v45, %s5671_s7 }
 0xeda   :  { %3332 = vrot.lane.b32.xlu0 %v5390_v45, %s4910_s22 }
 0xf04   :  { %v2312_v13 = vpop.xlane.xlu0 %2311 }
 0xf05   :  { %4695 = vrcp.f32 %v2312_v13  ;;  %v2479_v14 = vpop.xlane.xlu1 %2478 }
 0xf06   :  { %4697 = vrcp.f32 %v2479_v14 }
 0xf08   :  { %v2483_v18 = vpop.permute.xlu0 %2482 }
 0xf10   :  { %v2821_v19 = vpop.xlane.xlu1 %2820 }
 0xf12   :  { %v4696_v15 = vpop.eup %4695 }
 0xf13   :  { %v2314_v16 = vmul.f32 %v4696_v15, %v4680_v38  ;;  %v4698_v17 = vpop.eup %4697 }
 0xf14   :  { %v2481_v45 = vmul.f32 %v4698_v17, %v5466_v39  ;;  %v3162_v49 = vpop.permute.xlu1 %3161 }
 0xf15   :  { %4485 = vmatmul.mubr.msk.f32.vlgmr.msra.gmra.mxu0 %vm396_vm3, %v2314_v16 }
 0xf16   :  { %4493 = vmatpush3.msra.mxu0 %v2483_v18  ;;  %4494 = vmatprep.mubr.msk.f32.mxu0 %vm4901_vm2, %v4900_v44 }
 0xf17   :  { %4502 = vmatprep.subr.mxu0 %v4900_v44 }
 0xf19   :  { %4495 = vmatmul.mubr.msk.f32.vlgmr.msra.gmra.mxu0 %vm396_vm3, %v2481_v45 }
 0xf1a   :  { %4503 = vmatpush3.msra.mxu0 %v2654_v10  ;;  %4504 = vmatprep.mubr.msk.f32.mxu0 %vm4901_vm2, %v4900_v44 }
 0xf1b   :  { %4512 = vmatprep.subr.mxu0 %v4900_v44 }
 0xf39   :  { %v2650_v20 = vpop.xlane.xlu0 %2649 }
 0xf3a   :  { %4699 = vrcp.f32 %v2650_v20 }
 0xf3b   :  { %4701 = vrcp.f32 %v2821_v19 }
 0xf3d   :  { %v2991_v21 = vpop.xlane.xlu0 %2990 }
 0xf3e   :  { %4703 = vrcp.f32 %v2991_v21 }
 0xf41   :  { %v3329_v22 = vpop.xlane.xlu0 %3328 }
 0xf45   :  { %v3158_v23 = vpop.xlane.xlu1 %3157 }
 0xf46   :  { %4705 = vrcp.f32 %v3158_v23  ;;  %v4174_v23 = vld [vmem:[%s5647_s12 + $0x30] sm:$0xff] }
 0xf47   :  { %v4700_v24 = vpop.eup %4699  ;;  %4707 = vrcp.f32 %v3329_v22 }
 0xf48   :  { %v2652_v25 = vmul.f32 %v4700_v24, %v4686_v63  ;;  %v4702_v26 = vpop.eup %4701  ;;  %v4173_v24 = vld [vmem:[%s5647_s12 + $0x28] sm:$0xff] }
 0xf49   :  { %v2823_v27 = vmul.f32 %v4702_v26, %v5472_v51  ;;  %v3504_v34 = vpop.permute.xlu1 %3503  ;;  %v4186_v26 = vld [vmem:[%s5649_s14 + $0x78] sm:$0xff] }
 0xf4a   :  { %4505 = vmatmul.mubr.msk.f32.vlgmr.msra.gmra.mxu0 %vm396_vm3, %v2652_v25  ;;  %v4172_v25 = vld [vmem:[%s5647_s12 + $0x20] sm:$0xff]  ;;  %4579 = vmatprep.subr.mxu1 %v4186_v26 }
 0xf4b   :  { %4513 = vmatpush3.msra.mxu0 %v2825_v11  ;;  %4514 = vmatprep.mubr.msk.f32.mxu0 %vm4901_vm2, %v4900_v44  ;;  %v4704_v43 = vpop.eup %4703 }
 0xf4c   :  { %4522 = vmatprep.subr.mxu0 %v4900_v44  ;;  %v2993_v28 = vmul.f32 %v4704_v43, %v5482_v0  ;;  %v4184_v43 = vld [vmem:[%s5649_s14 + $0x68] sm:$0xff] }
 0xf4d   :  { %v3500_v41 = vpop.xlane.xlu0 %3499 }
 0xf4e   :  { %4709 = vrcp.f32 %v3500_v41  ;;  %4515 = vmatmul.mubr.msk.f32.vlgmr.msra.gmra.mxu0 %vm396_vm3, %v2823_v27  ;;  %v4185_v27 = vld [vmem:[%s5649_s14 + $0x70] sm:$0xff]  ;;  %v4183_v41 = vld [vmem:[%s5649_s14 + $0x60] sm:$0xff] }
 0xf4f   :  { %4523 = vmatpush3.msra.mxu0 %v2995_v12  ;;  %4524 = vmatprep.mubr.msk.f32.mxu0 %vm4901_vm2, %v4900_v44 }
 0xf50   :  { %4532 = vmatprep.subr.mxu0 %v4900_v44 }
 0xf51   :  { %v3333_v32 = vpop.permute.xlu0 %3332 }
 0xf52   :  { %4525 = vmatmul.mubr.msk.f32.vlgmr.msra.gmra.mxu0 %vm396_vm3, %v2993_v28 }
 0xf53   :  { %v4706_v29 = vpop.eup %4705  ;;  %4533 = vmatpush3.msra.mxu0 %v3162_v49  ;;  %4534 = vmatprep.mubr.msk.f32.mxu0 %vm4901_vm2, %v4900_v44 }
 0xf54   :  { %4542 = vmatprep.subr.mxu0 %v4900_v44  ;;  %v3160_v30 = vmul.f32 %v4706_v29, %v4692_v6  ;;  %v4708_v31 = vpop.eup %4707 }
 0xf55   :  { %v3331_v33 = vmul.f32 %v4708_v31, %v5486_v4 }
 0xf56   :  { %4535 = vmatmul.mubr.msk.f32.vlgmr.msra.gmra.mxu0 %vm396_vm3, %v3160_v30 }
 0xf57   :  { %4543 = vmatpush3.msra.mxu0 %v3333_v32  ;;  %4544 = vmatprep.mubr.msk.f32.mxu0 %vm4901_vm2, %v4900_v44 }
 0xf58   :  { %4552 = vmatprep.subr.mxu0 %v4900_v44 }
 0xf5a   :  { %4545 = vmatmul.mubr.msk.f32.vlgmr.msra.gmra.mxu0 %vm396_vm3, %v3331_v33 }
 0xf5b   :  { %v4710_v35 = vpop.eup %4709  ;;  %4553 = vmatpush3.msra.mxu0 %v3504_v34  ;;  %4554 = vmatprep.mubr.msk.f32.mxu0 %vm4901_vm2, %v4900_v44 }
 0xf5c   :  { %v3502_v38 = vmul.f32 %v4710_v35, %v5491_v8  ;;  %v4170_v35 = vld [vmem:[%s5645_s10 + $0x1] ss:$0 sm:$0xff] }
 0xf5e   :  { %4555 = vmatmul.mubr.msk.f32.vlgmr.msra.gmra.mxu0 %vm396_vm3, %v3502_v38 }
 0xfd5   :  { %v2387_v39 = vpop.f32.mrf.mxu0 }
 0xfd6   :  { %2391 = vst.msk [vmem:[#allocation2] sm:$0xff] %vm396_vm3, %v2387_v39  ;;  %v4171_v39 = vld [vmem:[%s5646_s11 + $0x1] ss:$0 sm:$0xff] }
 0xfd7   :  { %v4486_v40 = vpop.f32.mrf.mxu0 }
 0xfd9   :  { %v2554_v46 = vpop.f32.mrf.mxu0 }
 0xfda   :  { %2559 = vrot.lane.b32.xlu0 %v2554_v46, %s4892_s3 }
 0xfdb   :  { %v4496_v47 = vpop.f32.mrf.mxu0 }
0x100a   :  { %v2725_v50 = vpop.f32.mrf.mxu0 }
0x100b   :  { %2730 = vrot.lane.b32.xlu1 %v2725_v50, %s4893_s29 }
0x100c   :  { %v4506_v51 = vpop.f32.mrf.mxu0 }
0x100e   :  { %v2896_v52 = vpop.f32.mrf.mxu0 }
0x100f   :  { %2901 = vrot.lane.b32.xlu1 %v2896_v52, %s4913_s21 }
0x1010   :  { %v4516_v44 = vpop.f32.mrf.mxu0 }
0x1011   :  { %v4182_v44 = vld [vmem:[%s5649_s14 + $0x58] sm:$0xff] }
0x1012   :  { %v3066_v53 = vpop.f32.mrf.mxu0 }
0x1013   :  { %3070 = vst.msk [vmem:[#allocation2 + $0x8] sm:$0xff] %vm396_vm3, %v3066_v53  ;;  %v4181_v53 = vld [vmem:[%s5649_s14 + $0x50] sm:$0xff] }
0x1014   :  { %v4526_v56 = vpop.f32.mrf.mxu0 }
0x1015   :  { %v4176_v56 = vld [vmem:[#allocation11 + $0x1] ss:$0 sm:$0xff] }
0x1016   :  { %v3233_v58 = vpop.f32.mrf.mxu0 }
0x1017   :  { %3238 = vrot.lane.b32.xlu0 %v3233_v58, %s4892_s3 }
0x1018   :  { %v4536_v60 = vpop.f32.mrf.mxu0 }
0x101a   :  { %v3404_v61 = vpop.f32.mrf.mxu0 }
0x101b   :  { %3409 = vrot.lane.b32.xlu0 %v3404_v61, %s4893_s29 }
0x101c   :  { %v4546_v62 = vpop.f32.mrf.mxu0 }
0x101e   :  { %v3575_v63 = vpop.f32.mrf.mxu0 }
0x101f   :  { %3580 = vrot.lane.b32.xlu1 %v3575_v63, %s4913_s21  ;;  %v4187_v63 = vld [vmem:[#allocation12 + $0x1] ss:$0 sm:$0xff] }
0x1020   :  { %v4556_v42 = vpop.f32.mrf.mxu0 }
0x104c   :  { %v2560_v0 = vpop.permute.xlu0 %2559 }
0x104d   :  { %2562 = vst.msk [vmem:[#allocation2] sm:$0xff] %vm730_vm4, %v2560_v0 }
0x107d   :  { %v2731_v1 = vpop.permute.xlu1 %2730 }
0x107e   :  { %2733 = vst.msk [vmem:[#allocation2] sm:$0xff] %vm902_vm5, %v2731_v1 }
0x1081   :  { %v2902_v48 = vpop.permute.xlu1 %2901 }
0x1082   :  { %2904 = vst.msk [vmem:[#allocation2] sm:$0xff] %vm1074_vm6, %v2902_v48 }
0x1089   :  { %v3239_v2 = vpop.permute.xlu0 %3238  ;;  %v3584_v3 = vld [vmem:[#allocation2] sm:$0xff] }
0x108a   :  { %3241 = vst.msk [vmem:[#allocation2 + $0x8] sm:$0xff] %vm730_vm4, %v3239_v2  ;;  %4565 = vmatprep.mubr.msk.f32.mxu1 %vm257_vm1, %v3584_v3 }
0x108d   :  { %v3410_v4 = vpop.permute.xlu0 %3409 }
0x108e   :  { %3412 = vst.msk [vmem:[#allocation2 + $0x8] sm:$0xff] %vm902_vm5, %v3410_v4 }
0x1091   :  { %v3581_v5 = vpop.permute.xlu1 %3580 }
0x1092   :  { %3583 = vst.msk [vmem:[#allocation2 + $0x8] sm:$0xff] %vm1074_vm6, %v3581_v5 }
0x1099   :  { %v3585_v6 = vld [vmem:[#allocation2 + $0x8] sm:$0xff] }
0x109a   :  { %4566 = vmatmul.mubr.msk.f32.vlgmr.msra.gmra.mxu1 %vm257_vm1, %v3585_v6 }
0x109b   :  { %4580 = vmatpush3.msra.mxu1 %v4186_v26 }
0x109c   :  { %4581 = vmatprep.subr.mxu1 %v4185_v27 }
0x109d   :  { %4582 = vmatpush3.msra.mxu1 %v4185_v27 }
0x109e   :  { %4583 = vmatprep.subr.mxu1 %v4184_v43 }
0x109f   :  { %4584 = vmatpush3.msra.mxu1 %v4184_v43  ;;  %v4193_v43 = vld [vmem:[%s5652_s17 + $0x1] ss:$0 sm:$0xff] }
0x10a0   :  { %4585 = vmatprep.subr.mxu1 %v4183_v41 }
0x10a1   :  { %4586 = vmatpush3.msra.mxu1 %v4183_v41 }
0x10a2   :  { %4587 = vmatprep.subr.mxu1 %v4182_v44 }
0x10a3   :  { %4588 = vmatpush3.msra.mxu1 %v4182_v44 }
0x10a4   :  { %4589 = vmatprep.subr.mxu1 %v4181_v53 }
0x10a5   :  { %4590 = vmatpush3.msra.mxu1 %v4181_v53 }
0x10a6   :  { %4591 = vmatprep.subr.mxu1 %v4180_v54 }
0x10a7   :  { %4592 = vmatpush3.msra.mxu1 %v4180_v54 }
0x10a8   :  { %4593 = vmatprep.subr.mxu1 %v4179_v55 }
0x10a9   :  { %4594 = vmatpush3.msra.mxu1 %v4179_v55 }
0x115a   :  { %v4567_v8 = vpop.f32.mrf.mxu1 }
0x115b   :  { %v3677_v9 = vadd.f32 %v4567_v8, %v4165_v7 }
0x115c   :  { %v3671_v10 = vpop.f32.mrf.mxu1 }
0x115d   :  { %v3681_v11 = vadd.f32 %v3677_v9, %v5365_v37  ;;  %v3672_v12 = vadd.f32 %v4165_v7, %v3671_v10 }
0x115f   :  { %v3680_v13 = vadd.f32 %v3672_v12, %v5363_v36  ;;  %v3689_v14 = vsel %vm257_vm1, %v3681_v11, 0.0  ;;  %v4175_v36 = vld [vmem:[%s5647_s12 + $0x38] sm:$0xff] }
0x1160   :  { %3690 = vadd.xlane.f32.xlu1 %v3689_v14  ;;  %4568 = vmatprep.subr.mxu0 %v4175_v36 }
0x1161   :  { %v3686_v15 = vsel %vm257_vm1, %v3680_v13, 0.0  ;;  %4569 = vmatpush3.msra.mxu0 %v4175_v36 }
0x1162   :  { %3687 = vadd.xlane.f32.xlu0 %v3686_v15  ;;  %4570 = vmatprep.subr.mxu0 %v4174_v23 }
0x1163   :  { %4571 = vmatpush3.msra.mxu0 %v4174_v23  ;;  %v4192_v23 = vld [vmem:[%s5651_s16 + $0x1] ss:$0 sm:$0xff]  ;;  %s4914_s16 = smov [#allocation15]  }
0x1164   :  { %4572 = vmatprep.subr.mxu0 %v4173_v24  ;;  %s4069_s6 = sshll.u32 %s4914_s16, 4  ;;  %s4070_s6 = int_to_ptr.vmem [resolvable:$true] %s4069_s6 }
0x1165   :  { %4573 = vmatpush3.msra.mxu0 %v4173_v24  ;;  %s4859_s17 = scalar_lea.vmem %s4070_s6, 256  ;;  %p4864_p8 = scmp.lt.s32.totalorder %s4070_s6, %s4070_s6 }
0x1166   :  { %4574 = vmatprep.subr.mxu0 %v4172_v25  ;;  %p4860_p7 = scmp.ne.s32.totalorder %s4070_s6, %s4859_s17  ;;  %p4865_p9 = scmp.lt.s32.totalorder %s4859_s17, %s4859_s17 }
0x1167   :  { %4575 = vmatpush3.msra.mxu0 %v4172_v25 }
0x1168   :  { %p4866_p10 = por %p4865_p9, %p4864_p8 }
0x116a   :  { %p4867_p11 = pnand %p4866_p10, %p4860_p7 }
0x11e9   :  { %v3691_v16 = vpop.xlane.xlu1 %3690 }
0x11ea   :  { %v3693_v17 = vmul.f32 0.03125, %v3691_v16  ;;  %v3973_v16 = vld [vmem:[#allocation14 + $0x18] sm:$0xff] }
0x11eb   :  { %v3688_v18 = vpop.xlane.xlu0 %3687  ;;  %4598 = vmatprep.subr.mxu0 %v3973_v16 }
0x11ec   :  { %v3692_v45 = vmul.f32 0.03125, %v3688_v18  ;;  %v3695_v19 = vsub.f32 %v3681_v11, %v3693_v17  ;;  %v3972_v17 = vld [vmem:[#allocation14 + $0x10] sm:$0xff]  ;;  %v3971_v18 = vld [vmem:[#allocation14 + $0x8] sm:$0xff] }
0x11ee   :  { %v3694_v20 = vsub.f32 %v3680_v13, %v3692_v45  ;;  %v3697_v22 = vmul.f32 %v3695_v19, %v3695_v19  ;;  %v3970_v45 = vld [vmem:[#allocation14] sm:$0xff] }
0x11f0   :  { %v3696_v21 = vmul.f32 %v3694_v20, %v3694_v20  ;;  %v3701_v37 = vsel %vm257_vm1, %v3697_v22, 0.0 }
0x11f2   :  { %v3698_v49 = vsel %vm257_vm1, %v3696_v21, 0.0 }
0x11f3   :  { %3699 = vadd.xlane.f32.xlu0 %v3698_v49 }
0x11f7   :  { %3702 = vadd.xlane.f32.xlu0 %v3701_v37 }
0x127c   :  { %v3700_v28 = vpop.xlane.xlu0 %3699 }
0x127d   :  { %v3704_v29 = vmul.f32 0.03125, %v3700_v28 }
0x127f   :  { %v3706_v30 = vadd.f32 1e-05, %v3704_v29 }
0x1280   :  { %v3703_v31 = vpop.xlane.xlu0 %3702 }
0x1281   :  { %4711 = vrsqrt.f32 %v3706_v30  ;;  %v3705_v32 = vmul.f32 0.03125, %v3703_v31  ;;  %v4194_v30 = vld [vmem:[%s5654_s19] ss:$0 sm:$0xff] }
0x1283   :  { %v3707_v33 = vadd.f32 1e-05, %v3705_v32 }
0x1285   :  { %4713 = vrsqrt.f32 %v3707_v33 }
0x128e   :  { %v4712_v34 = vpop.eup %4711 }
0x128f   :  { %v3710_v38 = vmul.f32 %v4712_v34, %v3694_v20 }
0x1291   :  { %v3718_v40 = vmul.f32 %v4170_v35, %v3710_v38 }
0x1292   :  { %v4714_v46 = vpop.eup %4713 }
0x1293   :  { %v3711_v47 = vmul.f32 %v4714_v46, %v3695_v19  ;;  %v3726_v50 = vadd.f32 %v4171_v39, %v3718_v40 }
0x1295   :  { %v3719_v51 = vmul.f32 %v4170_v35, %v3711_v47  ;;  %4576 = vmatprep.mubr.msk.f32.mxu0 %vm257_vm1, %v3726_v50 }
0x1297   :  { %v3727_v52 = vadd.f32 %v4171_v39, %v3719_v51 }
0x1299   :  { %4577 = vmatmul.mubr.msk.f32.vlgmr.msra.gmra.mxu0 %vm257_vm1, %v3727_v52 }
0x129a   :  { %4599 = vmatpush3.msra.mxu0 %v3973_v16 }
0x129b   :  { %4600 = vmatprep.subr.mxu0 %v3972_v17 }
0x129c   :  { %4601 = vmatpush3.msra.mxu0 %v3972_v17 }
0x129d   :  { %4602 = vmatprep.subr.mxu0 %v3971_v18 }
0x129e   :  { %4603 = vmatpush3.msra.mxu0 %v3971_v18 }
0x129f   :  { %4604 = vmatprep.subr.mxu0 %v3970_v45 }
0x12a0   :  { %4605 = vmatpush3.msra.mxu0 %v3970_v45 }
0x1359   :  { %v4578_v57 = vpop.f32.mrf.mxu0 }
0x135a   :  { %v3819_v58 = vadd.f32 %v4578_v57, %v4176_v56 }
0x135b   :  { %v3813_v59 = vpop.f32.mrf.mxu0 }
0x135c   :  { %v3814_v60 = vadd.f32 %v4176_v56, %v3813_v59  ;;  %v3823_v62 = vmax.f32 %v3819_v58, 0.0 }
0x135e   :  { %v3822_v61 = vmax.f32 %v3814_v60, 0.0 }
0x1360   :  { %4595 = vmatprep.mubr.msk.f32.mxu1 %vm2004_vm7, %v3822_v61 }
0x1361   :  { %4596 = vmatmul.mubr.msk.f32.vlgmr.msra.gmra.mxu1 %vm2004_vm7, %v3823_v62 }
0x1421   :  { %v4597_v42 = vpop.f32.mrf.mxu1 }
0x1422   :  { %v3919_v0 = vadd.f32 %v4597_v42, %v4187_v63 }
0x1423   :  { %v3913_v1 = vpop.f32.mrf.mxu1 }
0x1424   :  { %v3923_v48 = vadd.f32 %v3919_v0, %v3727_v52  ;;  %v3914_v2 = vadd.f32 %v4187_v63, %v3913_v1 }
0x1426   :  { %v3922_v3 = vadd.f32 %v3914_v2, %v3726_v50  ;;  %v3931_v4 = vsel %vm257_vm1, %v3923_v48, 0.0 }
0x1427   :  { %3932 = vadd.xlane.f32.xlu1 %v3931_v4 }
0x1428   :  { %v3928_v5 = vsel %vm257_vm1, %v3922_v3, 0.0 }
0x1429   :  { %3929 = vadd.xlane.f32.xlu0 %v3928_v5 }
0x14b0   :  { %v3933_v6 = vpop.xlane.xlu1 %3932 }
0x14b1   :  { %v3935_v7 = vmul.f32 0.03125, %v3933_v6 }
0x14b2   :  { %v3930_v8 = vpop.xlane.xlu0 %3929 }
0x14b3   :  { %v3937_v9 = vsub.f32 %v3923_v48, %v3935_v7  ;;  %v3934_v10 = vmul.f32 0.03125, %v3930_v8 }
0x14b5   :  { %v3936_v11 = vsub.f32 %v3922_v3, %v3934_v10  ;;  %v3939_v12 = vmul.f32 %v3937_v9, %v3937_v9 }
0x14b7   :  { %v3943_v13 = vsel %vm257_vm1, %v3939_v12, 0.0  ;;  %v3938_v14 = vmul.f32 %v3936_v11, %v3936_v11 }
0x14b8   :  { %3944 = vadd.xlane.f32.xlu1 %v3943_v13 }
0x14b9   :  { %v3940_v15 = vsel %vm257_vm1, %v3938_v14, 0.0 }
0x14ba   :  { %3941 = vadd.xlane.f32.xlu0 %v3940_v15 }
0x1541   :  { %v3945_v19 = vpop.xlane.xlu1 %3944 }
0x1542   :  { %v3947_v20 = vmul.f32 0.03125, %v3945_v19 }
0x1543   :  { %v3942_v21 = vpop.xlane.xlu0 %3941 }
0x1544   :  { %v3949_v49 = vadd.f32 1e-05, %v3947_v20  ;;  %v3946_v22 = vmul.f32 0.03125, %v3942_v21 }
0x1546   :  { %4715 = vrsqrt.f32 %v3949_v49  ;;  %v3948_v37 = vadd.f32 1e-05, %v3946_v22 }
0x1548   :  { %4717 = vrsqrt.f32 %v3948_v37 }
0x1553   :  { %v4716_v36 = vpop.eup %4715 }
0x1554   :  { %v3953_v24 = vmul.f32 %v4716_v36, %v3937_v9 }
0x1555   :  { %v4718_v25 = vpop.eup %4717 }
0x1556   :  { %v3952_v26 = vmul.f32 %v4718_v25, %v3936_v11  ;;  %v3961_v27 = vmul.f32 %v4192_v23, %v3953_v24 }
0x1558   :  { %v3960_v41 = vmul.f32 %v4192_v23, %v3952_v26  ;;  %v3969_v29 = vadd.f32 %v4193_v43, %v3961_v27 }
0x155a   :  { %v3968_v28 = vadd.f32 %v4193_v43, %v3960_v41 }
0x155c   :  { %4606 = vmatprep.mubr.msk.f32.mxu0 %vm257_vm1, %v3968_v28 }
0x155d   :  { %4607 = vmatmul.mubr.msk.f32.vlgmr.msra.gmra.mxu0 %vm257_vm1, %v3969_v29 }
0x161d   :  { %v4608_v31 = vpop.f32.mrf.mxu0 }
0x161e   :  { %v4059_v32 = vadd.f32 %v4608_v31, %v4194_v30 }
0x161f   :  { %v4053_v33 = vpop.f32.mrf.mxu0 }
0x1620   :  { %4063 = vst.msk [vmem:[#allocation15 + $0x8] sm:$0xff] %vm2004_vm7, %v4059_v32  ;;  %v4054_v34 = vadd.f32 %v4194_v30, %v4053_v33 }
0x1622   :  { %4062 = vst.msk [vmem:[#allocation15] sm:$0xff] %vm2004_vm7, %v4054_v34 }
0x1623   :  { %4870 = shalt.err (!%p4867_p11)
}
0x1624   :  { %s5673_s19 = smov 128  }
0x1625   :  { %4075 = dma.vmem_to_hbm [thread:$0]  %s4070_s6, 256, %s5655_s20, [#allocation5], %s5673_s19, %s5673_s19, %s4892_s3  }
0x1626   :  { %4887 = dma.done.wait [#allocation5], 256  }
0x1627   :  { %4888 = vsyncadd [#allocation5], 4294967040 }
0x1628   :  { %4079 = vsyncpa [#allocation4], 1 }
0x1629   :  { %4080 = vsyncpa [#allocation7], 1 }
0x162a   :  { %4081 = vsyncpa [#allocation10], 1 }
0x162b   :  { %4082 = vsyncpa [#allocation13], 1 }
0x162c   :  { %4083 = vsyncpa [#allocation5], 1 }

</bundles_post_ra>
